<compile_context>
chip_gen: v7x
topology: tpu7x:2x2x1
jax: 0.10.0
libtpu: 0.0.40
codegen_flags: <defaults>
</compile_context>

<pallas_src>
import functools

import jax
import jax.numpy as jnp
from jax.experimental import pallas as pl
from jax.experimental.pallas import tpu as pltpu

_VMEM_LIMIT = 32 * 1024 * 1024   # safe on v5e / v6e / v7x
_TM_MAX = 512                    # M-tile rows
_LANE = 128


def _round_up(x, m):
    return (x + m - 1) // m * m


def _tiles(m):
    """Pick the M tile (multiple of 16, bf16-sublane friendly) and padded M."""
    if m <= _TM_MAX:
        tm = _round_up(max(m, 1), 16)
        return tm, tm
    return _TM_MAX, _round_up(m, _TM_MAX)


# ----------------------------------------------------------------------------
# Pallas kernels
# ----------------------------------------------------------------------------

def _mm_bias_act_kernel(a_ref, w_ref, b_ref, o_ref, *, act):
    """o = act(a @ w + b); a:(TM,K) w:(K,Npad) b:(1,Npad) o:(TM,Npad)."""
    acc = jnp.dot(a_ref[...], w_ref[...], preferred_element_type=jnp.float32)
    acc = acc + b_ref[...]
    if act == "tanh":
        acc = jnp.tanh(acc)
    o_ref[...] = acc.astype(o_ref.dtype)


def _mm_stats_kernel(a_ref, w_ref, o_ref, stats_ref):
    """o = a @ w (no bias); per-tile column sum / sum-of-squares in epilogue.

    The statistics are taken from the f32 accumulator (exact); the activation
    itself is written in o_ref.dtype (bf16) to halve intermediate bandwidth.
    stats block (squeezed to (8, Npad)): row 0 = sum, row 1 = sum of squares.
    """
    acc = jnp.dot(a_ref[...], w_ref[...], preferred_element_type=jnp.float32)
    o_ref[...] = acc.astype(o_ref.dtype)
    npad = acc.shape[1]
    stats_ref[0:1, :] = jnp.sum(acc, axis=0, keepdims=True)
    stats_ref[1:2, :] = jnp.sum(acc * acc, axis=0, keepdims=True)
    stats_ref[2:8, :] = jnp.zeros((6, npad), jnp.float32)


def _affine_relu_kernel(y_ref, sc_ref, sh_ref, o_ref):
    """o = relu(y * scale + shift); the BatchNorm+ReLU apply pass (f32 math)."""
    y = y_ref[...].astype(jnp.float32)
    o_ref[...] = jnp.maximum(y * sc_ref[...] + sh_ref[...], 0.0).astype(o_ref.dtype)


# ----------------------------------------------------------------------------
# Pallas wrappers (M-tiled, lane-padded N, parallel grid)
# ----------------------------------------------------------------------------

def _mm_pallas(a, w, b, act="none"):
    """act(a @ w + b) with M tiling and N padded to 128 lanes. Returns (M,N) f32."""
    m, k = a.shape
    n = w.shape[1]
    npad = _round_up(n, _LANE)
    tm, mpad = _tiles(m)
    t = mpad // tm
    a_p = jnp.pad(a, ((0, mpad - m), (0, 0)))
    w_p = jnp.pad(w, ((0, 0), (0, npad - n)))
    b_p = jnp.pad(b.astype(jnp.float32).reshape(1, n), ((0, 0), (0, npad - n)))
    cost = pl.CostEstimate(
        flops=2 * mpad * k * npad,
        transcendentals=mpad * npad if act == "tanh" else 0,
        bytes_accessed=int(a_p.size * a_p.dtype.itemsize
                           + w_p.size * w_p.dtype.itemsize + mpad * npad * 4))
    out = pl.pallas_call(
        functools.partial(_mm_bias_act_kernel, act=act),
        out_shape=jax.ShapeDtypeStruct((mpad, npad), jnp.float32),
        grid=(t,),
        in_specs=[
            pl.BlockSpec((tm, k), lambda i: (i, 0)),
            pl.BlockSpec((k, npad), lambda i: (0, 0)),   # resident weight
            pl.BlockSpec((1, npad), lambda i: (0, 0)),   # resident bias
        ],
        out_specs=pl.BlockSpec((tm, npad), lambda i: (i, 0)),
        compiler_params=pltpu.CompilerParams(
            dimension_semantics=("parallel",), vmem_limit_bytes=_VMEM_LIMIT),
        cost_estimate=cost,
    )(a_p, w_p, b_p)
    return out[:m, :n]


def _mm_bn_relu_pallas(a, w, gamma, beta, *, groups, bn_count, eps=1e-5):
    """ReLU(BatchNorm(a @ w)) with training-mode (biased-variance) batch stats.

    Matmul columns are `groups` repeats of the real channel axis (groups=4 for
    the polyphase transposed conv, 1 for the encoder convs); the statistics
    are reduced over all rows *and* groups per real channel (exact over the
    full M even when M is tiled).  Returns a bf16 (M, N) activation (the next
    layer's im2col consumes bf16 anyway).
    """
    m, k = a.shape
    n = w.shape[1]                      # = groups * C
    c = n // groups
    npad = _round_up(n, _LANE)
    tm, mpad = _tiles(m)
    t = mpad // tm
    a_p = jnp.pad(a, ((0, mpad - m), (0, 0)))
    w_p = jnp.pad(w, ((0, 0), (0, npad - n)))
    cost1 = pl.CostEstimate(
        flops=2 * mpad * k * npad, transcendentals=0,
        bytes_accessed=int(a_p.size * a_p.dtype.itemsize
                           + w_p.size * w_p.dtype.itemsize + mpad * npad * 2))

    # Pass 1: matmul + per-tile partial stats (padded rows are zero and the
    # conv bias is omitted, so the partial sums are exact).
    y, stats = pl.pallas_call(
        _mm_stats_kernel,
        out_shape=(jax.ShapeDtypeStruct((mpad, npad), jnp.bfloat16),
                   jax.ShapeDtypeStruct((t, 8, npad), jnp.float32)),
        grid=(t,),
        in_specs=[
            pl.BlockSpec((tm, k), lambda i: (i, 0)),
            pl.BlockSpec((k, npad), lambda i: (0, 0)),
        ],
        out_specs=(pl.BlockSpec((tm, npad), lambda i: (i, 0)),
                   pl.BlockSpec((None, 8, npad), lambda i: (i, 0, 0))),
        compiler_params=pltpu.CompilerParams(
            dimension_semantics=("parallel",), vmem_limit_bytes=_VMEM_LIMIT),
        cost_estimate=cost1,
    )(a_p, w_p)

    # Tiny O(C) finalize in XLA: combine per-tile / per-group partial sums into
    # per-channel scale/shift rows (all O(M*N) work stays in Pallas).
    st = stats[:, 0:2, :n].sum(axis=0)               # (2, n)
    st = st.reshape(2, groups, c).sum(axis=1)        # (2, C)
    mean = st[0] / bn_count
    var = jnp.maximum(st[1] / bn_count - mean * mean, 0.0)   # biased variance
    scale_c = gamma * jax.lax.rsqrt(var + eps)
    shift_c = beta - mean * scale_c
    scale = jnp.pad(jnp.tile(scale_c, groups), (0, npad - n)).reshape(1, npad)
    shift = jnp.pad(jnp.tile(shift_c, groups), (0, npad - n)).reshape(1, npad)

    # Pass 2: lightweight affine + ReLU apply, tiled over M, bf16 in / bf16 out.
    cost2 = pl.CostEstimate(
        flops=2 * mpad * npad, transcendentals=0,
        bytes_accessed=int(mpad * npad * 4))
    out = pl.pallas_call(
        _affine_relu_kernel,
        out_shape=jax.ShapeDtypeStruct((mpad, npad), jnp.bfloat16),
        grid=(t,),
        in_specs=[
            pl.BlockSpec((tm, npad), lambda i: (i, 0)),
            pl.BlockSpec((1, npad), lambda i: (0, 0)),
            pl.BlockSpec((1, npad), lambda i: (0, 0)),
        ],
        out_specs=pl.BlockSpec((tm, npad), lambda i: (i, 0)),
        compiler_params=pltpu.CompilerParams(
            dimension_semantics=("parallel",), vmem_limit_bytes=_VMEM_LIMIT),
        cost_estimate=cost2,
    )(y, scale, shift)
    return out[:m, :n]


# ----------------------------------------------------------------------------
# Conv / transposed-conv blocks (XLA im2col glue + fused Pallas matmuls)
# ----------------------------------------------------------------------------

def conv2d_s2_bn_relu(x_nhwc, p):
    """Conv2d(k=3, s=2, p=1, reflect) + BN + ReLU (conv bias cancelled by BN)."""
    n, h, w, cin = x_nhwc.shape
    cout = p["w"].shape[0]
    ho, wo = h // 2, w // 2
    xp = jnp.pad(x_nhwc, ((0, 0), (1, 1), (1, 1), (0, 0)), mode="reflect")
    taps = [xp[:, kh:kh + 2 * ho:2, kw:kw + 2 * wo:2, :]
            for kh in range(3) for kw in range(3)]
    cols = jnp.concatenate(taps, axis=-1).reshape(n * ho * wo, 9 * cin)
    # (Cout, Cin, kh, kw) -> (kh, kw, Cin, Cout) -> (9*Cin, Cout), matches tap order
    w_mat = jnp.transpose(p["w"], (2, 3, 1, 0)).reshape(9 * cin, cout)
    y = _mm_bn_relu_pallas(cols.astype(jnp.bfloat16), w_mat.astype(jnp.bfloat16),
                           p["gamma"], p["beta"],
                           groups=1, bn_count=float(n * ho * wo))
    return y.reshape(n, ho, wo, cout)


# (output parity r, window offset d) -> kernel tap index, derived from
#   out[2m + r] = sum_d xp[m + d] * w[k(r, d)]   with xp = zero-pad-by-1(x).
_TCONV_K = {(0, 0): 3, (0, 1): 1, (1, 1): 2, (1, 2): 0}


def _tconv_polyphase_weight(w_iohw):
    """(Cin, Cout, 4, 4) ConvTranspose2d weight -> (9*Cin, 4*Cout) polyphase matrix."""
    cin, cout = w_iohw.shape[0], w_iohw.shape[1]
    wp = jnp.zeros((3, 3, cin, 2, 2, cout), w_iohw.dtype)
    for (rh, dh), kh in _TCONV_K.items():
        for (rw, dw), kw in _TCONV_K.items():
            wp = wp.at[dh, dw, :, rh, rw, :].set(w_iohw[:, :, kh, kw])
    return wp.reshape(9 * cin, 4 * cout)


def conv_transpose2d_s2(x_nhwc, p, mode):
    """ConvTranspose2d(k=4, s=2, p=1) via 4-way polyphase decomposition.

    One matmul over 3x3 unit-stride windows of the zero-padded input; the four
    output parities are folded into the matmul N dimension and interleaved
    afterwards with a cheap depth-to-space reshape.
    mode: 'bn_relu' (+BatchNorm+ReLU, bias dropped) or 'tanh' (+bias+Tanh).
    """
    n, h, w, cin = x_nhwc.shape
    cout = p["w"].shape[1]
    xp = jnp.pad(x_nhwc, ((0, 0), (1, 1), (1, 1), (0, 0)))
    taps = [xp[:, dh:dh + h, dw:dw + w, :] for dh in range(3) for dw in range(3)]
    cols = jnp.concatenate(taps, axis=-1).reshape(n * h * w, 9 * cin)
    cols = cols.astype(jnp.bfloat16)
    w_mat = _tconv_polyphase_weight(p["w"]).astype(jnp.bfloat16)
    if mode == "bn_relu":
        y = _mm_bn_relu_pallas(cols, w_mat, p["gamma"], p["beta"],
                               groups=4, bn_count=float(n * 4 * h * w))
    else:  # final layer: bias + tanh (f32 output = model output)
        y = _mm_pallas(cols, w_mat, jnp.tile(p["b"], 4), act="tanh")
    y = y.reshape(n, h, w, 2, 2, cout)
    y = jnp.transpose(y, (0, 1, 3, 2, 4, 5)).reshape(n, 2 * h, 2 * w, cout)
    return y


# ----------------------------------------------------------------------------
# AVAE parameters and forward
# ----------------------------------------------------------------------------

class AVAEParams:
    def __init__(self, key, layers, image_size, z_dim):
        self.layers = layers
        self.s0 = image_size // 2 ** (len(layers) - 1)
        self.z_dim = z_dim
        keys = iter(jax.random.split(key, 64))

        def init(shape, scale=0.1):
            return (scale * jax.random.normal(next(keys), shape)).astype(jnp.float32)

        # encoder: Conv2d(layers[i]->layers[i+1], k3 s2 p1 reflect) + BN + ReLU.
        # Conv bias omitted: exactly cancelled by training-mode BN mean subtraction.
        self.enc = []
        for i in range(len(layers) - 1):
            ci, co = layers[i], layers[i + 1]
            self.enc.append(dict(
                w=init((co, ci, 3, 3)),
                gamma=1.0 + init((co,), 0.05), beta=init((co,), 0.05)))

        flat = layers[-1] * self.s0 * self.s0
        c, s = layers[-1], self.s0
        # Permutation NHWC-flat index -> NCHW-flat index.  Applied to the FC
        # weights at init so the FC layers consume / produce NHWC-flattened
        # activations directly (no runtime NCHW<->NHWC transposes).
        perm = jnp.transpose(jnp.arange(flat).reshape(c, s, s), (1, 2, 0)).reshape(-1)
        w_z_nchw, self.b_z = init((flat, z_dim)), init((z_dim,))
        w_zup_nchw, b_zup_nchw = init((z_dim, flat)), init((flat,))
        self.w_z = w_z_nchw[perm, :]
        self.w_zup = w_zup_nchw[:, perm]
        self.b_zup = b_zup_nchw[perm]

        # decoder: ConvTranspose2d(layers[i]->layers[i-1], k4 s2 p1) + BN + ReLU,
        # final ConvTranspose2d + Tanh. PyTorch weight layout (Cin, Cout, kh, kw).
        self.dec = []
        for i in range(len(layers) - 1, 1, -1):
            ci, co = layers[i], layers[i - 1]
            self.dec.append(dict(
                w=init((ci, co, 4, 4)),
                gamma=1.0 + init((co,), 0.05), beta=init((co,), 0.05)))
        self.dec_last = dict(w=init((layers[1], layers[0], 4, 4)),
                             b=init((layers[0],)))


def avae_forward(params, x_nchw):
    layers, s0 = params.layers, params.s0
    b = x_nchw.shape[0]
    h = jnp.transpose(x_nchw, (0, 2, 3, 1))          # NCHW -> NHWC (once)
    for p in params.enc:
        h = conv2d_s2_bn_relu(h, p)                  # bf16 activations
    # FC bottleneck in f32 (latent z is a model output; work here is tiny).
    h_flat = h.reshape(b, layers[-1] * s0 * s0).astype(jnp.float32)
    z = _mm_pallas(h_flat, params.w_z, params.b_z, act="none")        # fc_z
    z_up = _mm_pallas(z, params.w_zup, params.b_zup, act="none")      # fc_z_up
    d = z_up.reshape(b, s0, s0, layers[-1])          # NHWC (w_zup pre-permuted)
    for p in params.dec:
        d = conv_transpose2d_s2(d, p, mode="bn_relu")
    d = conv_transpose2d_s2(d, params.dec_last, mode="tanh")
    x_hat = jnp.transpose(d, (0, 3, 1, 2))           # NHWC -> NCHW (once)
    return x_hat, z


if __name__ == "__main__":
    key = jax.random.PRNGKey(0)
    kp, kx = jax.random.split(key)

    layers = [4, 8, 16]      # opt.layers
    image_size = 16          # opt.image_size
    z_dim = 32               # opt.z_dim
    batch = 2

    params = AVAEParams(kp, layers, image_size, z_dim)
    x = jax.random.normal(kx, (batch, layers[0], image_size, image_size), jnp.float32)

    fwd = jax.jit(lambda xx: avae_forward(params, xx))
    x_hat, z = fwd(x)
    jax.block_until_ready((x_hat, z))

    assert x_hat.shape == (batch, layers[0], image_size, image_size), x_hat.shape
    assert z.shape == (batch, z_dim), z.shape
    assert bool(jnp.all(jnp.isfinite(x_hat))) and bool(jnp.all(jnp.isfinite(z)))
    print("KERNEL_OK")
</pallas_src>

<mosaic_0001>
module attributes {stable_mosaic.version = 11 : i64} {
  func.func @_mm_stats_kernel(%arg0: i32, %arg1: memref<128x36xbf16, #tpu.memory_space<vmem>>, %arg2: memref<36x128xbf16, #tpu.memory_space<vmem>>, %arg3: memref<128x128xbf16, #tpu.memory_space<vmem>>, %arg4: memref<1x8x128xf32, #tpu.memory_space<vmem>>) attributes {dimension_semantics = [#tpu.dimension_semantics<parallel>], iteration_bounds = array<i64: 1>, scalar_prefetch = 0 : i64, scratch_operands = 0 : i64, tpu.core_type = #tpu.core_type<tc>, window_params = [{transform_indices = @transform_0, window_bounds = array<i64: 128, 36>}, {pipeline_mode = #tpu.pipeline_mode<synchronous>, transform_indices = @transform_1, window_bounds = array<i64: 36, 128>}, {transform_indices = @transform_2, window_bounds = array<i64: 128, 128>}, {transform_indices = @transform_3, window_bounds = array<i64: 1, 8, 128>}]} {
    %c0 = arith.constant 0 : index
    %c0_0 = arith.constant 0 : index
    %0 = vector.load %arg1[%c0, %c0_0] : memref<128x36xbf16, #tpu.memory_space<vmem>>, vector<128x36xbf16>
    %c0_1 = arith.constant 0 : index
    %c0_2 = arith.constant 0 : index
    %1 = vector.load %arg2[%c0_1, %c0_2] : memref<36x128xbf16, #tpu.memory_space<vmem>>, vector<36x128xbf16>
    %cst = arith.constant dense<0.000000e+00> : vector<128x128xf32>
    %2 = tpu.matmul %0, %1, %cst {dimension_numbers = #tpu.dot_dimension_numbers<[1], [0], [0], [1], [0, 0, 1, 1], [], []>} : vector<128x36xbf16>, vector<36x128xbf16>, vector<128x128xf32> -> vector<128x128xf32>
    %3 = arith.truncf %2 : vector<128x128xf32> to vector<128x128xbf16>
    %c0_3 = arith.constant 0 : index
    %c0_4 = arith.constant 0 : index
    %4 = vector.load %arg3[%c0_3, %c0_4] : memref<128x128xbf16, #tpu.memory_space<vmem>>, vector<128x128xbf16>
    tpu.vector_store %arg3[%c0_3, %c0_4], %3 {strides = array<i32>} : memref<128x128xbf16, #tpu.memory_space<vmem>>, vector<128x128xbf16>,
    %cst_5 = arith.constant dense<0.000000e+00> : vector<128xf32>
    %5 = vector.multi_reduction <add>, %2, %cst_5 [0] : vector<128x128xf32> to vector<128xf32>
    %6 = vector.shape_cast %5 : vector<128xf32> to vector<1x128xf32>
    %c0_6 = arith.constant 0 : index
    %c0_7 = arith.constant 0 : index
    %c0_8 = arith.constant 0 : index
    %7 = vector.load %arg4[%c0_6, %c0_7, %c0_8] : memref<1x8x128xf32, #tpu.memory_space<vmem>>, vector<1x1x128xf32>
    %8 = vector.shape_cast %7 : vector<1x1x128xf32> to vector<1x128xf32>
    %9 = vector.shape_cast %6 : vector<1x128xf32> to vector<1x1x128xf32>
    tpu.vector_store %arg4[%c0_6, %c0_7, %c0_8], %9 {strides = array<i32>} : memref<1x8x128xf32, #tpu.memory_space<vmem>>, vector<1x1x128xf32>,
    %10 = arith.mulf %2, %2 : vector<128x128xf32>
    %cst_9 = arith.constant dense<0.000000e+00> : vector<128xf32>
    %11 = vector.multi_reduction <add>, %10, %cst_9 [0] : vector<128x128xf32> to vector<128xf32>
    %12 = vector.shape_cast %11 : vector<128xf32> to vector<1x128xf32>
    %c0_10 = arith.constant 0 : index
    %c1 = arith.constant 1 : index
    %c0_11 = arith.constant 0 : index
    %13 = vector.load %arg4[%c0_10, %c1, %c0_11] : memref<1x8x128xf32, #tpu.memory_space<vmem>>, vector<1x1x128xf32>
    %14 = vector.shape_cast %13 : vector<1x1x128xf32> to vector<1x128xf32>
    %15 = vector.shape_cast %12 : vector<1x128xf32> to vector<1x1x128xf32>
    tpu.vector_store %arg4[%c0_10, %c1, %c0_11], %15 {strides = array<i32>} : memref<1x8x128xf32, #tpu.memory_space<vmem>>, vector<1x1x128xf32>,
    %cst_12 = arith.constant 0.000000e+00 : f32
    %16 = vector.broadcast %cst_12 : f32 to vector<6x128xf32>
    %c0_13 = arith.constant 0 : index
    %c2 = arith.constant 2 : index
    %c0_14 = arith.constant 0 : index
    %17 = vector.load %arg4[%c0_13, %c2, %c0_14] : memref<1x8x128xf32, #tpu.memory_space<vmem>>, vector<1x6x128xf32>
    %18 = vector.shape_cast %17 : vector<1x6x128xf32> to vector<6x128xf32>
    %19 = vector.shape_cast %16 : vector<6x128xf32> to vector<1x6x128xf32>
    tpu.vector_store %arg4[%c0_13, %c2, %c0_14], %19 {strides = array<i32>} : memref<1x8x128xf32, #tpu.memory_space<vmem>>, vector<1x6x128xf32>,
    return
  }
  func.func @transform_0(%arg0: i32) -> (i32, i32) {
    %c0_i32 = arith.constant 0 : i32
    %c0_i32_0 = arith.constant 0 : i32
    return %arg0, %c0_i32 : i32, i32
  }
  func.func @transform_1(%arg0: i32) -> (i32, i32) {
    %c0_i32 = arith.constant 0 : i32
    %c0_i32_0 = arith.constant 0 : i32
    %c0_i32_1 = arith.constant 0 : i32
    return %c0_i32, %c0_i32_0 : i32, i32
  }
  func.func @transform_2(%arg0: i32) -> (i32, i32) {
    %c0_i32 = arith.constant 0 : i32
    %c0_i32_0 = arith.constant 0 : i32
    return %arg0, %c0_i32 : i32, i32
  }
  func.func @transform_3(%arg0: i32) -> (i32, i32, i32) {
    %c0_i32 = arith.constant 0 : i32
    %c0_i32_0 = arith.constant 0 : i32
    %c0_i32_1 = arith.constant 0 : i32
    return %arg0, %c0_i32, %c0_i32_0 : i32, i32, i32
  }
}

module attributes {stable_mosaic.version = 11 : i64} {
  func.func @_affine_relu_kernel(%arg0: i32, %arg1: memref<128x128xbf16, #tpu.memory_space<vmem>>, %arg2: memref<1x128xf32, #tpu.memory_space<vmem>>, %arg3: memref<1x128xf32, #tpu.memory_space<vmem>>, %arg4: memref<128x128xbf16, #tpu.memory_space<vmem>>) attributes {dimension_semantics = [#tpu.dimension_semantics<parallel>], iteration_bounds = array<i64: 1>, scalar_prefetch = 0 : i64, scratch_operands = 0 : i64, tpu.core_type = #tpu.core_type<tc>, window_params = [{transform_indices = @transform_0, window_bounds = array<i64: 128, 128>}, {pipeline_mode = #tpu.pipeline_mode<synchronous>, transform_indices = @transform_1, window_bounds = array<i64: 1, 128>}, {pipeline_mode = #tpu.pipeline_mode<synchronous>, transform_indices = @transform_2, window_bounds = array<i64: 1, 128>}, {transform_indices = @transform_3, window_bounds = array<i64: 128, 128>}]} {
    %c0 = arith.constant 0 : index
    %c0_0 = arith.constant 0 : index
    %0 = vector.load %arg1[%c0, %c0_0] : memref<128x128xbf16, #tpu.memory_space<vmem>>, vector<128x128xbf16>
    %1 = arith.extf %0 : vector<128x128xbf16> to vector<128x128xf32>
    %c0_1 = arith.constant 0 : index
    %c0_2 = arith.constant 0 : index
    %2 = vector.load %arg2[%c0_1, %c0_2] : memref<1x128xf32, #tpu.memory_space<vmem>>, vector<1x128xf32>
    %3 = vector.broadcast %2 : vector<1x128xf32> to vector<128x128xf32>
    %4 = arith.mulf %1, %3 : vector<128x128xf32>
    %c0_3 = arith.constant 0 : index
    %c0_4 = arith.constant 0 : index
    %5 = vector.load %arg3[%c0_3, %c0_4] : memref<1x128xf32, #tpu.memory_space<vmem>>, vector<1x128xf32>
    %6 = vector.broadcast %5 : vector<1x128xf32> to vector<128x128xf32>
    %7 = arith.addf %4, %6 : vector<128x128xf32>
    %cst = arith.constant 0.000000e+00 : f32
    %8 = vector.broadcast %cst : f32 to vector<128x128xf32>
    %9 = arith.maximumf %7, %8 : vector<128x128xf32>
    %10 = arith.truncf %9 : vector<128x128xf32> to vector<128x128xbf16>
    %c0_5 = arith.constant 0 : index
    %c0_6 = arith.constant 0 : index
    %11 = vector.load %arg4[%c0_5, %c0_6] : memref<128x128xbf16, #tpu.memory_space<vmem>>, vector<128x128xbf16>
    tpu.vector_store %arg4[%c0_5, %c0_6], %10 {strides = array<i32>} : memref<128x128xbf16, #tpu.memory_space<vmem>>, vector<128x128xbf16>,
    return
  }
  func.func @transform_0(%arg0: i32) -> (i32, i32) {
    %c0_i32 = arith.constant 0 : i32
    %c0_i32_0 = arith.constant 0 : i32
    return %arg0, %c0_i32 : i32, i32
  }
  func.func @transform_1(%arg0: i32) -> (i32, i32) {
    %c0_i32 = arith.constant 0 : i32
    %c0_i32_0 = arith.constant 0 : i32
    %c0_i32_1 = arith.constant 0 : i32
    return %c0_i32, %c0_i32_0 : i32, i32
  }
  func.func @transform_2(%arg0: i32) -> (i32, i32) {
    %c0_i32 = arith.constant 0 : i32
    %c0_i32_0 = arith.constant 0 : i32
    %c0_i32_1 = arith.constant 0 : i32
    return %c0_i32, %c0_i32_0 : i32, i32
  }
  func.func @transform_3(%arg0: i32) -> (i32, i32) {
    %c0_i32 = arith.constant 0 : i32
    %c0_i32_0 = arith.constant 0 : i32
    return %arg0, %c0_i32 : i32, i32
  }
}

module attributes {stable_mosaic.version = 11 : i64} {
  func.func @_mm_stats_kernel(%arg0: i32, %arg1: memref<32x72xbf16, #tpu.memory_space<vmem>>, %arg2: memref<72x128xbf16, #tpu.memory_space<vmem>>, %arg3: memref<32x128xbf16, #tpu.memory_space<vmem>>, %arg4: memref<1x8x128xf32, #tpu.memory_space<vmem>>) attributes {dimension_semantics = [#tpu.dimension_semantics<parallel>], iteration_bounds = array<i64: 1>, scalar_prefetch = 0 : i64, scratch_operands = 0 : i64, tpu.core_type = #tpu.core_type<tc>, window_params = [{transform_indices = @transform_0, window_bounds = array<i64: 32, 72>}, {pipeline_mode = #tpu.pipeline_mode<synchronous>, transform_indices = @transform_1, window_bounds = array<i64: 72, 128>}, {transform_indices = @transform_2, window_bounds = array<i64: 32, 128>}, {transform_indices = @transform_3, window_bounds = array<i64: 1, 8, 128>}]} {
    %c0 = arith.constant 0 : index
    %c0_0 = arith.constant 0 : index
    %0 = vector.load %arg1[%c0, %c0_0] : memref<32x72xbf16, #tpu.memory_space<vmem>>, vector<32x72xbf16>
    %c0_1 = arith.constant 0 : index
    %c0_2 = arith.constant 0 : index
    %1 = vector.load %arg2[%c0_1, %c0_2] : memref<72x128xbf16, #tpu.memory_space<vmem>>, vector<72x128xbf16>
    %cst = arith.constant dense<0.000000e+00> : vector<32x128xf32>
    %2 = tpu.matmul %0, %1, %cst {dimension_numbers = #tpu.dot_dimension_numbers<[1], [0], [0], [1], [0, 0, 1, 1], [], []>} : vector<32x72xbf16>, vector<72x128xbf16>, vector<32x128xf32> -> vector<32x128xf32>
    %3 = arith.truncf %2 : vector<32x128xf32> to vector<32x128xbf16>
    %c0_3 = arith.constant 0 : index
    %c0_4 = arith.constant 0 : index
    %4 = vector.load %arg3[%c0_3, %c0_4] : memref<32x128xbf16, #tpu.memory_space<vmem>>, vector<32x128xbf16>
    tpu.vector_store %arg3[%c0_3, %c0_4], %3 {strides = array<i32>} : memref<32x128xbf16, #tpu.memory_space<vmem>>, vector<32x128xbf16>,
    %cst_5 = arith.constant dense<0.000000e+00> : vector<128xf32>
    %5 = vector.multi_reduction <add>, %2, %cst_5 [0] : vector<32x128xf32> to vector<128xf32>
    %6 = vector.shape_cast %5 : vector<128xf32> to vector<1x128xf32>
    %c0_6 = arith.constant 0 : index
    %c0_7 = arith.constant 0 : index
    %c0_8 = arith.constant 0 : index
    %7 = vector.load %arg4[%c0_6, %c0_7, %c0_8] : memref<1x8x128xf32, #tpu.memory_space<vmem>>, vector<1x1x128xf32>
    %8 = vector.shape_cast %7 : vector<1x1x128xf32> to vector<1x128xf32>
    %9 = vector.shape_cast %6 : vector<1x128xf32> to vector<1x1x128xf32>
    tpu.vector_store %arg4[%c0_6, %c0_7, %c0_8], %9 {strides = array<i32>} : memref<1x8x128xf32, #tpu.memory_space<vmem>>, vector<1x1x128xf32>,
    %10 = arith.mulf %2, %2 : vector<32x128xf32>
    %cst_9 = arith.constant dense<0.000000e+00> : vector<128xf32>
    %11 = vector.multi_reduction <add>, %10, %cst_9 [0] : vector<32x128xf32> to vector<128xf32>
    %12 = vector.shape_cast %11 : vector<128xf32> to vector<1x128xf32>
    %c0_10 = arith.constant 0 : index
    %c1 = arith.constant 1 : index
    %c0_11 = arith.constant 0 : index
    %13 = vector.load %arg4[%c0_10, %c1, %c0_11] : memref<1x8x128xf32, #tpu.memory_space<vmem>>, vector<1x1x128xf32>
    %14 = vector.shape_cast %13 : vector<1x1x128xf32> to vector<1x128xf32>
    %15 = vector.shape_cast %12 : vector<1x128xf32> to vector<1x1x128xf32>
    tpu.vector_store %arg4[%c0_10, %c1, %c0_11], %15 {strides = array<i32>} : memref<1x8x128xf32, #tpu.memory_space<vmem>>, vector<1x1x128xf32>,
    %cst_12 = arith.constant 0.000000e+00 : f32
    %16 = vector.broadcast %cst_12 : f32 to vector<6x128xf32>
    %c0_13 = arith.constant 0 : index
    %c2 = arith.constant 2 : index
    %c0_14 = arith.constant 0 : index
    %17 = vector.load %arg4[%c0_13, %c2, %c0_14] : memref<1x8x128xf32, #tpu.memory_space<vmem>>, vector<1x6x128xf32>
    %18 = vector.shape_cast %17 : vector<1x6x128xf32> to vector<6x128xf32>
    %19 = vector.shape_cast %16 : vector<6x128xf32> to vector<1x6x128xf32>
    tpu.vector_store %arg4[%c0_13, %c2, %c0_14], %19 {strides = array<i32>} : memref<1x8x128xf32, #tpu.memory_space<vmem>>, vector<1x6x128xf32>,
    return
  }
  func.func @transform_0(%arg0: i32) -> (i32, i32) {
    %c0_i32 = arith.constant 0 : i32
    %c0_i32_0 = arith.constant 0 : i32
    return %arg0, %c0_i32 : i32, i32
  }
  func.func @transform_1(%arg0: i32) -> (i32, i32) {
    %c0_i32 = arith.constant 0 : i32
    %c0_i32_0 = arith.constant 0 : i32
    %c0_i32_1 = arith.constant 0 : i32
    return %c0_i32, %c0_i32_0 : i32, i32
  }
  func.func @transform_2(%arg0: i32) -> (i32, i32) {
    %c0_i32 = arith.constant 0 : i32
    %c0_i32_0 = arith.constant 0 : i32
    return %arg0, %c0_i32 : i32, i32
  }
  func.func @transform_3(%arg0: i32) -> (i32, i32, i32) {
    %c0_i32 = arith.constant 0 : i32
    %c0_i32_0 = arith.constant 0 : i32
    %c0_i32_1 = arith.constant 0 : i32
    return %arg0, %c0_i32, %c0_i32_0 : i32, i32, i32
  }
}

module attributes {stable_mosaic.version = 11 : i64} {
  func.func @_affine_relu_kernel(%arg0: i32, %arg1: memref<32x128xbf16, #tpu.memory_space<vmem>>, %arg2: memref<1x128xf32, #tpu.memory_space<vmem>>, %arg3: memref<1x128xf32, #tpu.memory_space<vmem>>, %arg4: memref<32x128xbf16, #tpu.memory_space<vmem>>) attributes {dimension_semantics = [#tpu.dimension_semantics<parallel>], iteration_bounds = array<i64: 1>, scalar_prefetch = 0 : i64, scratch_operands = 0 : i64, tpu.core_type = #tpu.core_type<tc>, window_params = [{transform_indices = @transform_0, window_bounds = array<i64: 32, 128>}, {pipeline_mode = #tpu.pipeline_mode<synchronous>, transform_indices = @transform_1, window_bounds = array<i64: 1, 128>}, {pipeline_mode = #tpu.pipeline_mode<synchronous>, transform_indices = @transform_2, window_bounds = array<i64: 1, 128>}, {transform_indices = @transform_3, window_bounds = array<i64: 32, 128>}]} {
    %c0 = arith.constant 0 : index
    %c0_0 = arith.constant 0 : index
    %0 = vector.load %arg1[%c0, %c0_0] : memref<32x128xbf16, #tpu.memory_space<vmem>>, vector<32x128xbf16>
    %1 = arith.extf %0 : vector<32x128xbf16> to vector<32x128xf32>
    %c0_1 = arith.constant 0 : index
    %c0_2 = arith.constant 0 : index
    %2 = vector.load %arg2[%c0_1, %c0_2] : memref<1x128xf32, #tpu.memory_space<vmem>>, vector<1x128xf32>
    %3 = vector.broadcast %2 : vector<1x128xf32> to vector<32x128xf32>
    %4 = arith.mulf %1, %3 : vector<32x128xf32>
    %c0_3 = arith.constant 0 : index
    %c0_4 = arith.constant 0 : index
    %5 = vector.load %arg3[%c0_3, %c0_4] : memref<1x128xf32, #tpu.memory_space<vmem>>, vector<1x128xf32>
    %6 = vector.broadcast %5 : vector<1x128xf32> to vector<32x128xf32>
    %7 = arith.addf %4, %6 : vector<32x128xf32>
    %cst = arith.constant 0.000000e+00 : f32
    %8 = vector.broadcast %cst : f32 to vector<32x128xf32>
    %9 = arith.maximumf %7, %8 : vector<32x128xf32>
    %10 = arith.truncf %9 : vector<32x128xf32> to vector<32x128xbf16>
    %c0_5 = arith.constant 0 : index
    %c0_6 = arith.constant 0 : index
    %11 = vector.load %arg4[%c0_5, %c0_6] : memref<32x128xbf16, #tpu.memory_space<vmem>>, vector<32x128xbf16>
    tpu.vector_store %arg4[%c0_5, %c0_6], %10 {strides = array<i32>} : memref<32x128xbf16, #tpu.memory_space<vmem>>, vector<32x128xbf16>,
    return
  }
  func.func @transform_0(%arg0: i32) -> (i32, i32) {
    %c0_i32 = arith.constant 0 : i32
    %c0_i32_0 = arith.constant 0 : i32
    return %arg0, %c0_i32 : i32, i32
  }
  func.func @transform_1(%arg0: i32) -> (i32, i32) {
    %c0_i32 = arith.constant 0 : i32
    %c0_i32_0 = arith.constant 0 : i32
    %c0_i32_1 = arith.constant 0 : i32
    return %c0_i32, %c0_i32_0 : i32, i32
  }
  func.func @transform_2(%arg0: i32) -> (i32, i32) {
    %c0_i32 = arith.constant 0 : i32
    %c0_i32_0 = arith.constant 0 : i32
    %c0_i32_1 = arith.constant 0 : i32
    return %c0_i32, %c0_i32_0 : i32, i32
  }
  func.func @transform_3(%arg0: i32) -> (i32, i32) {
    %c0_i32 = arith.constant 0 : i32
    %c0_i32_0 = arith.constant 0 : i32
    return %arg0, %c0_i32 : i32, i32
  }
}

module attributes {stable_mosaic.version = 11 : i64} {
  func.func @_mm_bias_act_kernel(%arg0: i32, %arg1: memref<16x256xf32, #tpu.memory_space<vmem>>, %arg2: memref<256x128xf32, #tpu.memory_space<vmem>>, %arg3: memref<1x128xf32, #tpu.memory_space<vmem>>, %arg4: memref<16x128xf32, #tpu.memory_space<vmem>>) attributes {dimension_semantics = [#tpu.dimension_semantics<parallel>], iteration_bounds = array<i64: 1>, scalar_prefetch = 0 : i64, scratch_operands = 0 : i64, tpu.core_type = #tpu.core_type<tc>, window_params = [{transform_indices = @transform_0, window_bounds = array<i64: 16, 256>}, {pipeline_mode = #tpu.pipeline_mode<synchronous>, transform_indices = @transform_1, window_bounds = array<i64: 256, 128>}, {pipeline_mode = #tpu.pipeline_mode<synchronous>, transform_indices = @transform_2, window_bounds = array<i64: 1, 128>}, {transform_indices = @transform_3, window_bounds = array<i64: 16, 128>}]} {
    %c0 = arith.constant 0 : index
    %c0_0 = arith.constant 0 : index
    %0 = vector.load %arg1[%c0, %c0_0] : memref<16x256xf32, #tpu.memory_space<vmem>>, vector<16x256xf32>
    %c0_1 = arith.constant 0 : index
    %c0_2 = arith.constant 0 : index
    %1 = vector.load %arg2[%c0_1, %c0_2] : memref<256x128xf32, #tpu.memory_space<vmem>>, vector<256x128xf32>
    %cst = arith.constant dense<0.000000e+00> : vector<16x128xf32>
    %2 = tpu.matmul %0, %1, %cst {dimension_numbers = #tpu.dot_dimension_numbers<[1], [0], [0], [1], [0, 0, 1, 1], [], []>} : vector<16x256xf32>, vector<256x128xf32>, vector<16x128xf32> -> vector<16x128xf32>
    %c0_3 = arith.constant 0 : index
    %c0_4 = arith.constant 0 : index
    %3 = vector.load %arg3[%c0_3, %c0_4] : memref<1x128xf32, #tpu.memory_space<vmem>>, vector<1x128xf32>
    %4 = vector.broadcast %3 : vector<1x128xf32> to vector<16x128xf32>
    %5 = arith.addf %2, %4 : vector<16x128xf32>
    %c0_5 = arith.constant 0 : index
    %c0_6 = arith.constant 0 : index
    %6 = vector.load %arg4[%c0_5, %c0_6] : memref<16x128xf32, #tpu.memory_space<vmem>>, vector<16x128xf32>
    tpu.vector_store %arg4[%c0_5, %c0_6], %5 {strides = array<i32>} : memref<16x128xf32, #tpu.memory_space<vmem>>, vector<16x128xf32>,
    return
  }
  func.func @transform_0(%arg0: i32) -> (i32, i32) {
    %c0_i32 = arith.constant 0 : i32
    %c0_i32_0 = arith.constant 0 : i32
    return %arg0, %c0_i32 : i32, i32
  }
  func.func @transform_1(%arg0: i32) -> (i32, i32) {
    %c0_i32 = arith.constant 0 : i32
    %c0_i32_0 = arith.constant 0 : i32
    %c0_i32_1 = arith.constant 0 : i32
    return %c0_i32, %c0_i32_0 : i32, i32
  }
  func.func @transform_2(%arg0: i32) -> (i32, i32) {
    %c0_i32 = arith.constant 0 : i32
    %c0_i32_0 = arith.constant 0 : i32
    %c0_i32_1 = arith.constant 0 : i32
    return %c0_i32, %c0_i32_0 : i32, i32
  }
  func.func @transform_3(%arg0: i32) -> (i32, i32) {
    %c0_i32 = arith.constant 0 : i32
    %c0_i32_0 = arith.constant 0 : i32
    return %arg0, %c0_i32 : i32, i32
  }
}

module attributes {stable_mosaic.version = 11 : i64} {
  func.func @_mm_stats_kernel(%arg0: i32, %arg1: memref<32x144xbf16, #tpu.memory_space<vmem>>, %arg2: memref<144x128xbf16, #tpu.memory_space<vmem>>, %arg3: memref<32x128xbf16, #tpu.memory_space<vmem>>, %arg4: memref<1x8x128xf32, #tpu.memory_space<vmem>>) attributes {dimension_semantics = [#tpu.dimension_semantics<parallel>], iteration_bounds = array<i64: 1>, scalar_prefetch = 0 : i64, scratch_operands = 0 : i64, tpu.core_type = #tpu.core_type<tc>, window_params = [{transform_indices = @transform_0, window_bounds = array<i64: 32, 144>}, {pipeline_mode = #tpu.pipeline_mode<synchronous>, transform_indices = @transform_1, window_bounds = array<i64: 144, 128>}, {transform_indices = @transform_2, window_bounds = array<i64: 32, 128>}, {transform_indices = @transform_3, window_bounds = array<i64: 1, 8, 128>}]} {
    %c0 = arith.constant 0 : index
    %c0_0 = arith.constant 0 : index
    %0 = vector.load %arg1[%c0, %c0_0] : memref<32x144xbf16, #tpu.memory_space<vmem>>, vector<32x144xbf16>
    %c0_1 = arith.constant 0 : index
    %c0_2 = arith.constant 0 : index
    %1 = vector.load %arg2[%c0_1, %c0_2] : memref<144x128xbf16, #tpu.memory_space<vmem>>, vector<144x128xbf16>
    %cst = arith.constant dense<0.000000e+00> : vector<32x128xf32>
    %2 = tpu.matmul %0, %1, %cst {dimension_numbers = #tpu.dot_dimension_numbers<[1], [0], [0], [1], [0, 0, 1, 1], [], []>} : vector<32x144xbf16>, vector<144x128xbf16>, vector<32x128xf32> -> vector<32x128xf32>
    %3 = arith.truncf %2 : vector<32x128xf32> to vector<32x128xbf16>
    %c0_3 = arith.constant 0 : index
    %c0_4 = arith.constant 0 : index
    %4 = vector.load %arg3[%c0_3, %c0_4] : memref<32x128xbf16, #tpu.memory_space<vmem>>, vector<32x128xbf16>
    tpu.vector_store %arg3[%c0_3, %c0_4], %3 {strides = array<i32>} : memref<32x128xbf16, #tpu.memory_space<vmem>>, vector<32x128xbf16>,
    %cst_5 = arith.constant dense<0.000000e+00> : vector<128xf32>
    %5 = vector.multi_reduction <add>, %2, %cst_5 [0] : vector<32x128xf32> to vector<128xf32>
    %6 = vector.shape_cast %5 : vector<128xf32> to vector<1x128xf32>
    %c0_6 = arith.constant 0 : index
    %c0_7 = arith.constant 0 : index
    %c0_8 = arith.constant 0 : index
    %7 = vector.load %arg4[%c0_6, %c0_7, %c0_8] : memref<1x8x128xf32, #tpu.memory_space<vmem>>, vector<1x1x128xf32>
    %8 = vector.shape_cast %7 : vector<1x1x128xf32> to vector<1x128xf32>
    %9 = vector.shape_cast %6 : vector<1x128xf32> to vector<1x1x128xf32>
    tpu.vector_store %arg4[%c0_6, %c0_7, %c0_8], %9 {strides = array<i32>} : memref<1x8x128xf32, #tpu.memory_space<vmem>>, vector<1x1x128xf32>,
    %10 = arith.mulf %2, %2 : vector<32x128xf32>
    %cst_9 = arith.constant dense<0.000000e+00> : vector<128xf32>
    %11 = vector.multi_reduction <add>, %10, %cst_9 [0] : vector<32x128xf32> to vector<128xf32>
    %12 = vector.shape_cast %11 : vector<128xf32> to vector<1x128xf32>
    %c0_10 = arith.constant 0 : index
    %c1 = arith.constant 1 : index
    %c0_11 = arith.constant 0 : index
    %13 = vector.load %arg4[%c0_10, %c1, %c0_11] : memref<1x8x128xf32, #tpu.memory_space<vmem>>, vector<1x1x128xf32>
    %14 = vector.shape_cast %13 : vector<1x1x128xf32> to vector<1x128xf32>
    %15 = vector.shape_cast %12 : vector<1x128xf32> to vector<1x1x128xf32>
    tpu.vector_store %arg4[%c0_10, %c1, %c0_11], %15 {strides = array<i32>} : memref<1x8x128xf32, #tpu.memory_space<vmem>>, vector<1x1x128xf32>,
    %cst_12 = arith.constant 0.000000e+00 : f32
    %16 = vector.broadcast %cst_12 : f32 to vector<6x128xf32>
    %c0_13 = arith.constant 0 : index
    %c2 = arith.constant 2 : index
    %c0_14 = arith.constant 0 : index
    %17 = vector.load %arg4[%c0_13, %c2, %c0_14] : memref<1x8x128xf32, #tpu.memory_space<vmem>>, vector<1x6x128xf32>
    %18 = vector.shape_cast %17 : vector<1x6x128xf32> to vector<6x128xf32>
    %19 = vector.shape_cast %16 : vector<6x128xf32> to vector<1x6x128xf32>
    tpu.vector_store %arg4[%c0_13, %c2, %c0_14], %19 {strides = array<i32>} : memref<1x8x128xf32, #tpu.memory_space<vmem>>, vector<1x6x128xf32>,
    return
  }
  func.func @transform_0(%arg0: i32) -> (i32, i32) {
    %c0_i32 = arith.constant 0 : i32
    %c0_i32_0 = arith.constant 0 : i32
    return %arg0, %c0_i32 : i32, i32
  }
  func.func @transform_1(%arg0: i32) -> (i32, i32) {
    %c0_i32 = arith.constant 0 : i32
    %c0_i32_0 = arith.constant 0 : i32
    %c0_i32_1 = arith.constant 0 : i32
    return %c0_i32, %c0_i32_0 : i32, i32
  }
  func.func @transform_2(%arg0: i32) -> (i32, i32) {
    %c0_i32 = arith.constant 0 : i32
    %c0_i32_0 = arith.constant 0 : i32
    return %arg0, %c0_i32 : i32, i32
  }
  func.func @transform_3(%arg0: i32) -> (i32, i32, i32) {
    %c0_i32 = arith.constant 0 : i32
    %c0_i32_0 = arith.constant 0 : i32
    %c0_i32_1 = arith.constant 0 : i32
    return %arg0, %c0_i32, %c0_i32_0 : i32, i32, i32
  }
}

module attributes {stable_mosaic.version = 11 : i64} {
  func.func @_mm_bias_act_kernel(%arg0: i32, %arg1: memref<16x32xf32, #tpu.memory_space<vmem>>, %arg2: memref<32x256xf32, #tpu.memory_space<vmem>>, %arg3: memref<1x256xf32, #tpu.memory_space<vmem>>, %arg4: memref<16x256xf32, #tpu.memory_space<vmem>>) attributes {dimension_semantics = [#tpu.dimension_semantics<parallel>], iteration_bounds = array<i64: 1>, scalar_prefetch = 0 : i64, scratch_operands = 0 : i64, tpu.core_type = #tpu.core_type<tc>, window_params = [{transform_indices = @transform_0, window_bounds = array<i64: 16, 32>}, {pipeline_mode = #tpu.pipeline_mode<synchronous>, transform_indices = @transform_1, window_bounds = array<i64: 32, 256>}, {pipeline_mode = #tpu.pipeline_mode<synchronous>, transform_indices = @transform_2, window_bounds = array<i64: 1, 256>}, {transform_indices = @transform_3, window_bounds = array<i64: 16, 256>}]} {
    %c0 = arith.constant 0 : index
    %c0_0 = arith.constant 0 : index
    %0 = vector.load %arg1[%c0, %c0_0] : memref<16x32xf32, #tpu.memory_space<vmem>>, vector<16x32xf32>
    %c0_1 = arith.constant 0 : index
    %c0_2 = arith.constant 0 : index
    %1 = vector.load %arg2[%c0_1, %c0_2] : memref<32x256xf32, #tpu.memory_space<vmem>>, vector<32x256xf32>
    %cst = arith.constant dense<0.000000e+00> : vector<16x256xf32>
    %2 = tpu.matmul %0, %1, %cst {dimension_numbers = #tpu.dot_dimension_numbers<[1], [0], [0], [1], [0, 0, 1, 1], [], []>} : vector<16x32xf32>, vector<32x256xf32>, vector<16x256xf32> -> vector<16x256xf32>
    %c0_3 = arith.constant 0 : index
    %c0_4 = arith.constant 0 : index
    %3 = vector.load %arg3[%c0_3, %c0_4] : memref<1x256xf32, #tpu.memory_space<vmem>>, vector<1x256xf32>
    %4 = vector.broadcast %3 : vector<1x256xf32> to vector<16x256xf32>
    %5 = arith.addf %2, %4 : vector<16x256xf32>
    %c0_5 = arith.constant 0 : index
    %c0_6 = arith.constant 0 : index
    %6 = vector.load %arg4[%c0_5, %c0_6] : memref<16x256xf32, #tpu.memory_space<vmem>>, vector<16x256xf32>
    tpu.vector_store %arg4[%c0_5, %c0_6], %5 {strides = array<i32>} : memref<16x256xf32, #tpu.memory_space<vmem>>, vector<16x256xf32>,
    return
  }
  func.func @transform_0(%arg0: i32) -> (i32, i32) {
    %c0_i32 = arith.constant 0 : i32
    %c0_i32_0 = arith.constant 0 : i32
    return %arg0, %c0_i32 : i32, i32
  }
  func.func @transform_1(%arg0: i32) -> (i32, i32) {
    %c0_i32 = arith.constant 0 : i32
    %c0_i32_0 = arith.constant 0 : i32
    %c0_i32_1 = arith.constant 0 : i32
    return %c0_i32, %c0_i32_0 : i32, i32
  }
  func.func @transform_2(%arg0: i32) -> (i32, i32) {
    %c0_i32 = arith.constant 0 : i32
    %c0_i32_0 = arith.constant 0 : i32
    %c0_i32_1 = arith.constant 0 : i32
    return %c0_i32, %c0_i32_0 : i32, i32
  }
  func.func @transform_3(%arg0: i32) -> (i32, i32) {
    %c0_i32 = arith.constant 0 : i32
    %c0_i32_0 = arith.constant 0 : i32
    return %arg0, %c0_i32 : i32, i32
  }
}

module attributes {stable_mosaic.version = 11 : i64} {
  func.func @_mm_bias_act_kernel(%arg0: i32, %arg1: memref<128x72xbf16, #tpu.memory_space<vmem>>, %arg2: memref<72x128xbf16, #tpu.memory_space<vmem>>, %arg3: memref<1x128xf32, #tpu.memory_space<vmem>>, %arg4: memref<128x128xf32, #tpu.memory_space<vmem>>) attributes {dimension_semantics = [#tpu.dimension_semantics<parallel>], iteration_bounds = array<i64: 1>, scalar_prefetch = 0 : i64, scratch_operands = 0 : i64, tpu.core_type = #tpu.core_type<tc>, window_params = [{transform_indices = @transform_0, window_bounds = array<i64: 128, 72>}, {pipeline_mode = #tpu.pipeline_mode<synchronous>, transform_indices = @transform_1, window_bounds = array<i64: 72, 128>}, {pipeline_mode = #tpu.pipeline_mode<synchronous>, transform_indices = @transform_2, window_bounds = array<i64: 1, 128>}, {transform_indices = @transform_3, window_bounds = array<i64: 128, 128>}]} {
    %c0 = arith.constant 0 : index
    %c0_0 = arith.constant 0 : index
    %0 = vector.load %arg1[%c0, %c0_0] : memref<128x72xbf16, #tpu.memory_space<vmem>>, vector<128x72xbf16>
    %c0_1 = arith.constant 0 : index
    %c0_2 = arith.constant 0 : index
    %1 = vector.load %arg2[%c0_1, %c0_2] : memref<72x128xbf16, #tpu.memory_space<vmem>>, vector<72x128xbf16>
    %cst = arith.constant dense<0.000000e+00> : vector<128x128xf32>
    %2 = tpu.matmul %0, %1, %cst {dimension_numbers = #tpu.dot_dimension_numbers<[1], [0], [0], [1], [0, 0, 1, 1], [], []>} : vector<128x72xbf16>, vector<72x128xbf16>, vector<128x128xf32> -> vector<128x128xf32>
    %c0_3 = arith.constant 0 : index
    %c0_4 = arith.constant 0 : index
    %3 = vector.load %arg3[%c0_3, %c0_4] : memref<1x128xf32, #tpu.memory_space<vmem>>, vector<1x128xf32>
    %4 = vector.broadcast %3 : vector<1x128xf32> to vector<128x128xf32>
    %5 = arith.addf %2, %4 : vector<128x128xf32>
    %6 = math.tanh %5 : vector<128x128xf32>
    %c0_5 = arith.constant 0 : index
    %c0_6 = arith.constant 0 : index
    %7 = vector.load %arg4[%c0_5, %c0_6] : memref<128x128xf32, #tpu.memory_space<vmem>>, vector<128x128xf32>
    tpu.vector_store %arg4[%c0_5, %c0_6], %6 {strides = array<i32>} : memref<128x128xf32, #tpu.memory_space<vmem>>, vector<128x128xf32>,
    return
  }
  func.func @transform_0(%arg0: i32) -> (i32, i32) {
    %c0_i32 = arith.constant 0 : i32
    %c0_i32_0 = arith.constant 0 : i32
    return %arg0, %c0_i32 : i32, i32
  }
  func.func @transform_1(%arg0: i32) -> (i32, i32) {
    %c0_i32 = arith.constant 0 : i32
    %c0_i32_0 = arith.constant 0 : i32
    %c0_i32_1 = arith.constant 0 : i32
    return %c0_i32, %c0_i32_0 : i32, i32
  }
  func.func @transform_2(%arg0: i32) -> (i32, i32) {
    %c0_i32 = arith.constant 0 : i32
    %c0_i32_0 = arith.constant 0 : i32
    %c0_i32_1 = arith.constant 0 : i32
    return %c0_i32, %c0_i32_0 : i32, i32
  }
  func.func @transform_3(%arg0: i32) -> (i32, i32) {
    %c0_i32 = arith.constant 0 : i32
    %c0_i32_0 = arith.constant 0 : i32
    return %arg0, %c0_i32 : i32, i32
  }
}

</mosaic_0001>

<bundles_post_ra>
// kernel: tile.26
= control target key start
LH: loop header
LB: loop body
LE: loop exit
PB: predicated region body
PF: predicated region fallthrough
CT: control target
= control target key end

     0   :  { %s22_s0 = inlined_call_operand.vmem [shape: f32[4], index: 0, kind: input, shape index: {}]   ;;  %s23_s1 = inlined_call_operand.vmem [shape: f32[4,4], index: 1, kind: output, shape index: {}]  }
   0x1   :  { %v4_v0 = vld [vmem:[%s22_s0] ss:$0 sm:$0xff] }
   0x2   :  { %5 = vst [vmem:[%s23_s1] sm:$0xf] %v4_v0 }

// kernel: tile.27
= control target key start
LH: loop header
LB: loop body
LE: loop exit
PB: predicated region body
PF: predicated region fallthrough
CT: control target
= control target key end

     0   :  { %vm7_vm0 = vcmask 31744   ;;  %s37_s8 = smov 4   ;;  %s38_s9 = smov 8   ;;  %vm13_vm1 = vcmask 130144   ;;  %vm19_vm2 = vcmask 97344   ;;  %vm25_vm3 = vcmask 64544   ;;  %s55_s0 = inlined_call_operand.vmem [shape: f32[4,4], index: 0, kind: input, shape index: {}]   ;;  %s56_s1 = inlined_call_operand.vmem [shape: f32[1,16], index: 1, kind: output, shape index: {}]  }
   0x1   :  { %v4_v0 = vld [vmem:[%s55_s0] sm:$0xf]  ;;  %s36_s0 = smov 12  }
   0x2   :  { %5 = vst [vmem:[#allocation1] sm:$0xf] %v4_v0 }
   0x9   :  { %v10_v1 = vld [vmem:[#allocation1 + $0x3] sm:$0x1]   ;;  %v22_v2 = vld [vmem:[#allocation1 + $0x1] sm:$0x1]   ;;  %v6_v3 = vld [vmem:[#allocation1] sm:$0x1]  }
   0xa   :  { %11 = vrot.lane.b32.xlu0 %v10_v1, %s36_s0  ;;  %23 = vrot.lane.b32.xlu1 %v22_v2, %s37_s8  ;;  %v16_v4 = vld [vmem:[#allocation1 + $0x2] sm:$0x1]   ;;  %8 = vst.msk [vmem:[#allocation0] sm:$0x1] %vm7_vm0, %v6_v3  }
   0xe   :  { %17 = vrot.lane.b32.xlu0 %v16_v4, %s38_s9 }
  0x7c   :  { %v12_v5 = vpop.permute.xlu0 %11   ;;  %v24_v6 = vpop.permute.xlu1 %23  }
  0x7d   :  { %14 = vst.msk [vmem:[#allocation0] sm:$0x1] %vm13_vm1, %v12_v5  }
  0x80   :  { %v18_v7 = vpop.permute.xlu0 %17  }
  0x81   :  { %20 = vst.msk [vmem:[#allocation0] sm:$0x1] %vm19_vm2, %v18_v7  }
  0x82   :  { %26 = vst.msk [vmem:[#allocation0] sm:$0x1] %vm25_vm3, %v24_v6  }
  0x89   :  { %v30_v8 = vld [vmem:[#allocation0] sm:$0x1] }
  0x8a   :  { %32 = vst [vmem:[%s56_s1] sm:$0x1] %v30_v8 }

// kernel: _lambda_.9
= control target key start
LH: loop header
LB: loop body
LE: loop exit
PB: predicated region body
PF: predicated region fallthrough
CT: control target
= control target key end

     0   :  { %vm90_vm0 = vcmask 293888   ;;  %vm115_vm1 = vcmask 1041408   ;;  %v516_v12 = vmov 0.0   ;;  %s611_s1 = inlined_call_operand.vmem [shape: bf16[36,128], index: 1, kind: input, shape index: {}]   ;;  %s612_s0 = inlined_call_operand.vmem [shape: bf16[128,36], index: 0, kind: input, shape index: {}]   ;;  %s613_s3 = inlined_call_operand.vmem [shape: f32[1,8,128], index: 3, kind: output, shape index: {1}]   ;;  %s614_s2 = inlined_call_operand.vmem [shape: bf16[128,128], index: 2, kind: output, shape index: {0}]  }
   0x1   :  { %v505_v0 = vld [vmem:[%s611_s1] sm:$0xff]   ;;  %v506_v1 = vld [vmem:[%s611_s1 + $0x8] sm:$0xff]   ;;  %v507_v2 = vld [vmem:[%s611_s1 + $0x10] ss:$0 sps:$4 sm:$0x33]  }
   0x2   :  { %474 = vmatprep.subr.bf16.mxu0 %v505_v0  ;;  %v508_v3 = vld [vmem:[%s612_s0] sm:$0xff]   ;;  %496 = vmatprep.subr.bf16.mxu1 %v505_v0  ;;  %v117_v5 = vsel %vm115_vm1, %v507_v2, 0  ;;  %v509_v6 = vld [vmem:[%s612_s0 + $0x8] sm:$0xff]   ;;  %v510_v8 = vld [vmem:[%s612_s0 + $0x10] sm:$0xff]   ;;  %356 = vst [vmem:[%s613_s3 + $0x2] sm:$0x3f] %v516_v12 }
   0x3   :  { %475 = vmatpush3.bf16.msra.mxu0 %v505_v0  ;;  %499 = vmatpush3.bf16.msra.mxu1 %v505_v0  ;;  %v512_v4 = vld [vmem:[%s612_s0 + $0x20] sm:$0xff]   ;;  %v513_v7 = vld [vmem:[%s612_s0 + $0x28] sm:$0xff]   ;;  %v514_v9 = vld [vmem:[%s612_s0 + $0x30] sm:$0xff]  }
   0x4   :  { %476 = vmatprep.subr.bf16.mxu0 %v506_v1  ;;  %480 = vmatprep.mubr.msk.bf16.mxu0 %vm90_vm0, %v508_v3  ;;  %v511_v10 = vld [vmem:[%s612_s0 + $0x18] sm:$0xff]  }
   0x5   :  { %497 = vmatprep.subr.bf16.mxu1 %v506_v1  ;;  %488 = vmatprep.mubr.msk.bf16.mxu1 %vm90_vm0, %v512_v4  ;;  %v515_v11 = vld [vmem:[%s612_s0 + $0x38] sm:$0xff]  }
   0x7   :  { %477 = vmatpush3.bf16.msra.mxu0 %v506_v1  ;;  %500 = vmatpush3.bf16.msra.mxu1 %v506_v1 }
   0x8   :  { %502 = vmatprep.subr.msk.bf16.mxu0 %vm115_vm1, %v507_v2  ;;  %503 = vmatprep.subr.msk.bf16.mxu1 %vm115_vm1, %v507_v2 }
   0xb   :  { %479 = vmatpush3.bf16.msra.mxu0 %v117_v5  ;;  %501 = vmatpush3.bf16.msra.mxu1 %v117_v5 }
   0xe   :  { %481 = vmatmul.mubr.msk.bf16.vlgmr.msra.gmra.mrb[0].mxu0 %vm90_vm0, %v509_v6  ;;  %489 = vmatmul.mubr.msk.bf16.vlgmr.msra.gmra.mrb[0].mxu1 %vm90_vm0, %v513_v7 }
   0xf   :  { %484 = vmatprep.mubr.msk.bf16.mxu0 %vm90_vm0, %v510_v8  ;;  %492 = vmatprep.mubr.msk.bf16.mxu1 %vm90_vm0, %v514_v9 }
  0x16   :  { %485 = vmatmul.mubr.msk.bf16.gmra.mrb[4].mxu0 %vm90_vm0, %v511_v10  ;;  %493 = vmatmul.mubr.msk.bf16.gmra.mrb[4].mxu1 %vm90_vm0, %v515_v11 }
  0xe1   :  { %v482_v13 = vpop.f32.mrb[0].mxu0  ;;  %v490_v14 = vpop.f32.mrb[0].mxu1 }
  0xe2   :  { %v153_v15 = vpop.f32.mrb[1].mxu0  ;;  %v185_v16 = vpop.f32.mrb[1].mxu1  ;;  %v320_v28 = vmul.f32 %v482_v13, %v482_v13  ;;  %v328_v0 = vmul.f32 %v490_v14, %v490_v14 }
  0xe3   :  { %v483_v17 = vpop.f32.mrb[2].mxu0  ;;  %v491_v18 = vpop.f32.mrb[2].mxu1  ;;  %v318_v19 = vmul.f32 %v153_v15, %v153_v15  ;;  %v326_v58 = vmul.f32 %v185_v16, %v185_v16 }
  0xe4   :  { %v424_v20 = vpack.c.bf16 %v483_v17, %v482_v13  ;;  %v156_v21 = vpop.f32.mrb[3].mxu0  ;;  %v444_v22 = vpack.c.bf16 %v491_v18, %v490_v14  ;;  %v188_v23 = vpop.f32.mrb[3].mxu1  ;;  %v321_v31 = vmul.f32 %v483_v17, %v483_v17  ;;  %v329_v3 = vmul.f32 %v491_v18, %v491_v18 }
  0xe5   :  { %v419_v24 = vpack.c.bf16 %v156_v21, %v153_v15  ;;  %v296_v25 = vadd.f32 %v156_v21, %v153_v15  ;;  %v319_v26 = vmul.f32 %v156_v21, %v156_v21  ;;  %v439_v27 = vpack.c.bf16 %v188_v23, %v185_v16 }
  0xe6   :  { %456 = vst [vmem:[%s614_s2 + $0x8] sm:$0xff] %v424_v20   ;;  %460 = vst [vmem:[%s614_s2 + $0x28] sm:$0xff] %v444_v22   ;;  %v327_v63 = vmul.f32 %v188_v23, %v188_v23 }
  0xe7   :  { %420 = vst [vmem:[%s614_s2] sm:$0xff] %v419_v24   ;;  %v297_v29 = vadd.f32 %v482_v13, %v296_v25  ;;  %v334_v30 = vadd.f32 %v319_v26, %v318_v19  ;;  %459 = vst [vmem:[%s614_s2 + $0x20] sm:$0xff] %v439_v27  }
  0xe9   :  { %v335_v32 = vadd.f32 %v334_v30, %v320_v28  ;;  %v486_v33 = vpop.f32.mrb[4].mxu0  ;;  %v298_v34 = vadd.f32 %v483_v17, %v297_v29  ;;  %v494_v35 = vpop.f32.mrb[4].mxu1 }
  0xea   :  { %v169_v36 = vpop.f32.mrb[5].mxu0  ;;  %v201_v37 = vpop.f32.mrb[5].mxu1  ;;  %v324_v52 = vmul.f32 %v486_v33, %v486_v33  ;;  %v332_v12 = vmul.f32 %v494_v35, %v494_v35 }
  0xeb   :  { %v299_v38 = vadd.f32 %v298_v34, %v169_v36  ;;  %v322_v39 = vmul.f32 %v169_v36, %v169_v36  ;;  %v336_v40 = vadd.f32 %v335_v32, %v321_v31  ;;  %v487_v41 = vpop.f32.mrb[6].mxu0  ;;  %v495_v42 = vpop.f32.mrb[6].mxu1  ;;  %v330_v6 = vmul.f32 %v201_v37, %v201_v37 }
  0xec   :  { %v434_v43 = vpack.c.bf16 %v487_v41, %v486_v33  ;;  %v172_v44 = vpop.f32.mrb[7].mxu0  ;;  %v454_v45 = vpack.c.bf16 %v495_v42, %v494_v35  ;;  %v204_v46 = vpop.f32.mrb[7].mxu1  ;;  %v325_v55 = vmul.f32 %v487_v41, %v487_v41 }
  0xed   :  { %v337_v47 = vadd.f32 %v336_v40, %v322_v39  ;;  %v429_v48 = vpack.c.bf16 %v172_v44, %v169_v36  ;;  %v300_v49 = vadd.f32 %v299_v38, %v172_v44  ;;  %v323_v50 = vmul.f32 %v172_v44, %v172_v44 }
  0xee   :  { %458 = vst [vmem:[%s614_s2 + $0x18] sm:$0xff] %v434_v43   ;;  %462 = vst [vmem:[%s614_s2 + $0x38] sm:$0xff] %v454_v45   ;;  %v449_v51 = vpack.c.bf16 %v204_v46, %v201_v37  ;;  %v331_v11 = vmul.f32 %v204_v46, %v204_v46 }
  0xef   :  { %457 = vst [vmem:[%s614_s2 + $0x10] sm:$0xff] %v429_v48   ;;  %v301_v53 = vadd.f32 %v486_v33, %v300_v49  ;;  %v338_v54 = vadd.f32 %v337_v47, %v323_v50 }
  0xf0   :  { %461 = vst [vmem:[%s614_s2 + $0x30] sm:$0xff] %v449_v51  }
  0xf1   :  { %v339_v56 = vadd.f32 %v338_v54, %v324_v52  ;;  %v302_v57 = vadd.f32 %v487_v41, %v301_v53 }
  0xf3   :  { %v303_v59 = vadd.f32 %v302_v57, %v185_v16  ;;  %v340_v60 = vadd.f32 %v339_v56, %v325_v55  ;;  %v333_v16 = vmul.f32 %v495_v42, %v495_v42 }
  0xf5   :  { %v341_v61 = vadd.f32 %v340_v60, %v326_v58  ;;  %v304_v62 = vadd.f32 %v303_v59, %v188_v23 }
  0xf7   :  { %v305_v1 = vadd.f32 %v490_v14, %v304_v62  ;;  %v342_v2 = vadd.f32 %v341_v61, %v327_v63 }
  0xf9   :  { %v343_v4 = vadd.f32 %v342_v2, %v328_v0  ;;  %v306_v5 = vadd.f32 %v491_v18, %v305_v1 }
  0xfb   :  { %v307_v7 = vadd.f32 %v306_v5, %v201_v37  ;;  %v344_v8 = vadd.f32 %v343_v4, %v329_v3 }
  0xfd   :  { %v345_v9 = vadd.f32 %v344_v8, %v330_v6  ;;  %v308_v10 = vadd.f32 %v307_v7, %v204_v46 }
  0xff   :  { %v309_v13 = vadd.f32 %v494_v35, %v308_v10  ;;  %v346_v15 = vadd.f32 %v345_v9, %v331_v11 }
 0x101   :  { %v310_v17 = vadd.f32 %v495_v42, %v309_v13  ;;  %v347_v19 = vadd.f32 %v346_v15, %v332_v12 }
 0x103   :  { %v311_v20 = vrot.slane %v310_v17, 4  ;;  %v348_v21 = vadd.f32 %v347_v19, %v333_v16 }
 0x105   :  { %v312_v22 = vadd.f32 %v311_v20, %v310_v17  ;;  %v349_v14 = vrot.slane %v348_v21, 4 }
 0x107   :  { %v313_v23 = vrot.slane %v312_v22, 2  ;;  %v350_v24 = vadd.f32 %v349_v14, %v348_v21 }
 0x109   :  { %v314_v25 = vadd.f32 %v313_v23, %v312_v22  ;;  %v351_v18 = vrot.slane %v350_v24, 2 }
 0x10b   :  { %v315_v26 = vrot.slane %v314_v25, 1  ;;  %v352_v27 = vadd.f32 %v351_v18, %v350_v24 }
 0x10d   :  { %v316_v28 = vadd.f32 %v315_v26, %v314_v25  ;;  %v353_v29 = vrot.slane %v352_v27, 1 }
 0x10f   :  { %317 = vst [vmem:[%s613_s3] sm:$0x1] %v316_v28  ;;  %v354_v30 = vadd.f32 %v353_v29, %v352_v27 }
 0x111   :  { %355 = vst [vmem:[%s613_s3 + $0x1] sm:$0x1] %v354_v30 }

// kernel: _lambda_.10
= control target key start
LH: loop header
LB: loop body
LE: loop exit
PB: predicated region body
PF: predicated region fallthrough
CT: control target
= control target key end

     0   :  { %s422_s0 = inlined_call_operand.vmem [shape: bf16[128,128], index: 0, kind: input, shape index: {}]   ;;  %s423_s1 = inlined_call_operand.vmem [shape: f32[1,128], index: 1, kind: input, shape index: {}]   ;;  %s424_s2 = inlined_call_operand.vmem [shape: f32[1,128], index: 2, kind: input, shape index: {}]   ;;  %s425_s3 = inlined_call_operand.vmem [shape: bf16[128,128], index: 3, kind: output, shape index: {}]  }
   0x1   :  { %v227_v0 = vld [vmem:[%s422_s0] sm:$0xff]   ;;  %v298_v4 = vld [vmem:[%s422_s0 + $0x8] sm:$0xff]   ;;  %v299_v5 = vld [vmem:[%s422_s0 + $0x10] sm:$0xff]  }
   0x2   :  { %v338_v1 = vld [vmem:[%s423_s1] ss:$0 sm:$0xff]  ;;  %v228_v2 = vunpack.c.l.bf16 %v227_v0  ;;  %v229_v3 = vunpack.c.h.bf16 %v227_v0  ;;  %v300_v6 = vld [vmem:[%s422_s0 + $0x18] sm:$0xff]   ;;  %v232_v8 = vunpack.c.l.bf16 %v298_v4  ;;  %v233_v9 = vunpack.c.h.bf16 %v298_v4  ;;  %v302_v33 = vld [vmem:[%s422_s0 + $0x28] sm:$0xff]  }
   0x3   :  { %v352_v7 = vld [vmem:[%s424_s2] ss:$0 sm:$0xff]  ;;  %v236_v10 = vunpack.c.l.bf16 %v299_v5  ;;  %v237_v11 = vunpack.c.h.bf16 %v299_v5  ;;  %v240_v14 = vunpack.c.l.bf16 %v300_v6  ;;  %v241_v15 = vunpack.c.h.bf16 %v300_v6  ;;  %v303_v38 = vld [vmem:[%s422_s0 + $0x30] sm:$0xff]   ;;  %v304_v43 = vld [vmem:[%s422_s0 + $0x38] sm:$0xff]  }
   0x4   :  { %v53_v12 = vmul.f32 %v228_v2, %v338_v1  ;;  %v54_v13 = vmul.f32 %v229_v3, %v338_v1  ;;  %v55_v16 = vmul.f32 %v232_v8, %v338_v1  ;;  %v56_v17 = vmul.f32 %v233_v9, %v338_v1  ;;  %v301_v28 = vld [vmem:[%s422_s0 + $0x20] sm:$0xff]  }
   0x5   :  { %v57_v18 = vmul.f32 %v236_v10, %v338_v1  ;;  %v58_v19 = vmul.f32 %v237_v11, %v338_v1  ;;  %v59_v22 = vmul.f32 %v240_v14, %v338_v1  ;;  %v60_v23 = vmul.f32 %v241_v15, %v338_v1 }
   0x6   :  { %v76_v20 = vadd.f32 %v352_v7, %v53_v12  ;;  %v77_v21 = vadd.f32 %v352_v7, %v54_v13  ;;  %v78_v24 = vadd.f32 %v352_v7, %v55_v16  ;;  %v79_v25 = vadd.f32 %v352_v7, %v56_v17 }
   0x7   :  { %v80_v26 = vadd.f32 %v352_v7, %v57_v18  ;;  %v81_v27 = vadd.f32 %v352_v7, %v58_v19  ;;  %v82_v31 = vadd.f32 %v352_v7, %v59_v22  ;;  %v83_v32 = vadd.f32 %v352_v7, %v60_v23 }
   0x8   :  { %v92_v29 = vmax.f32 %v76_v20, 0.0  ;;  %v93_v30 = vmax.f32 %v77_v21, 0.0  ;;  %v94_v34 = vmax.f32 %v78_v24, 0.0  ;;  %v95_v35 = vmax.f32 %v79_v25, 0.0 }
   0x9   :  { %v96_v36 = vmax.f32 %v80_v26, 0.0  ;;  %v97_v37 = vmax.f32 %v81_v27, 0.0  ;;  %v98_v40 = vmax.f32 %v82_v31, 0.0  ;;  %v99_v41 = vmax.f32 %v83_v32, 0.0 }
   0xa   :  { %v261_v39 = vpack.c.bf16 %v93_v30, %v92_v29  ;;  %v244_v42 = vunpack.c.l.bf16 %v301_v28  ;;  %v266_v44 = vpack.c.bf16 %v95_v35, %v94_v34  ;;  %v245_v46 = vunpack.c.h.bf16 %v301_v28 }
   0xb   :  { %v271_v45 = vpack.c.bf16 %v97_v37, %v96_v36  ;;  %v248_v47 = vunpack.c.l.bf16 %v302_v33  ;;  %v276_v48 = vpack.c.bf16 %v99_v41, %v98_v40  ;;  %v249_v50 = vunpack.c.h.bf16 %v302_v33 }
   0xc   :  { %262 = vst [vmem:[%s425_s3] sm:$0xff] %v261_v39   ;;  %v61_v49 = vmul.f32 %v244_v42, %v338_v1  ;;  %v252_v51 = vunpack.c.l.bf16 %v303_v38  ;;  %305 = vst [vmem:[%s425_s3 + $0x8] sm:$0xff] %v266_v44   ;;  %v62_v52 = vmul.f32 %v245_v46, %v338_v1  ;;  %v253_v54 = vunpack.c.h.bf16 %v303_v38 }
   0xd   :  { %306 = vst [vmem:[%s425_s3 + $0x10] sm:$0xff] %v271_v45   ;;  %v63_v53 = vmul.f32 %v248_v47, %v338_v1  ;;  %v256_v55 = vunpack.c.l.bf16 %v304_v43  ;;  %307 = vst [vmem:[%s425_s3 + $0x18] sm:$0xff] %v276_v48   ;;  %v64_v57 = vmul.f32 %v249_v50, %v338_v1  ;;  %v257_v59 = vunpack.c.h.bf16 %v304_v43 }
   0xe   :  { %v84_v56 = vadd.f32 %v352_v7, %v61_v49  ;;  %v65_v58 = vmul.f32 %v252_v51, %v338_v1  ;;  %v85_v60 = vadd.f32 %v352_v7, %v62_v52  ;;  %v66_v62 = vmul.f32 %v253_v54, %v338_v1 }
   0xf   :  { %v86_v61 = vadd.f32 %v352_v7, %v63_v53  ;;  %v67_v63 = vmul.f32 %v256_v55, %v338_v1  ;;  %v87_v2 = vadd.f32 %v352_v7, %v64_v57  ;;  %v68_v4 = vmul.f32 %v257_v59, %v338_v1 }
  0x10   :  { %v100_v0 = vmax.f32 %v84_v56, 0.0  ;;  %v88_v3 = vadd.f32 %v352_v7, %v65_v58  ;;  %v101_v5 = vmax.f32 %v85_v60, 0.0  ;;  %v89_v8 = vadd.f32 %v352_v7, %v66_v62 }
  0x11   :  { %v102_v6 = vmax.f32 %v86_v61, 0.0  ;;  %v90_v9 = vadd.f32 %v352_v7, %v67_v63  ;;  %v103_v10 = vmax.f32 %v87_v2, 0.0  ;;  %v91_v12 = vadd.f32 %v352_v7, %v68_v4 }
  0x12   :  { %v104_v11 = vmax.f32 %v88_v3, 0.0  ;;  %v281_v13 = vpack.c.bf16 %v101_v5, %v100_v0  ;;  %v105_v14 = vmax.f32 %v89_v8, 0.0 }
  0x13   :  { %v106_v15 = vmax.f32 %v90_v9, 0.0  ;;  %v286_v16 = vpack.c.bf16 %v103_v10, %v102_v6  ;;  %v107_v17 = vmax.f32 %v91_v12, 0.0 }
  0x14   :  { %308 = vst [vmem:[%s425_s3 + $0x20] sm:$0xff] %v281_v13   ;;  %v291_v1 = vpack.c.bf16 %v105_v14, %v104_v11 }
  0x15   :  { %309 = vst [vmem:[%s425_s3 + $0x28] sm:$0xff] %v286_v16   ;;  %v296_v18 = vpack.c.bf16 %v107_v17, %v106_v15 }
  0x16   :  { %310 = vst [vmem:[%s425_s3 + $0x30] sm:$0xff] %v291_v1  }
  0x17   :  { %311 = vst [vmem:[%s425_s3 + $0x38] sm:$0xff] %v296_v18  }

// kernel: _lambda_.11
= control target key start
LH: loop header
LB: loop body
LE: loop exit
PB: predicated region body
PF: predicated region fallthrough
CT: control target
= control target key end

     0   :  { %vm64_vm0 = vcmask 588800   ;;  %vm71_vm1 = vcmask 1043456   ;;  %v235_v8 = vmov 0.0   ;;  %s292_s1 = inlined_call_operand.vmem [shape: bf16[72,128], index: 1, kind: input, shape index: {}]   ;;  %s293_s0 = inlined_call_operand.vmem [shape: bf16[32,72], index: 0, kind: input, shape index: {}]   ;;  %s294_s3 = inlined_call_operand.vmem [shape: f32[1,8,128], index: 3, kind: output, shape index: {1}]   ;;  %s295_s2 = inlined_call_operand.vmem [shape: bf16[32,128], index: 2, kind: output, shape index: {0}]  }
   0x1   :  { %v228_v0 = vld [vmem:[%s292_s1] sm:$0xff]   ;;  %v229_v1 = vld [vmem:[%s292_s1 + $0x8] sm:$0xff]   ;;  %v230_v2 = vld [vmem:[%s292_s1 + $0x10] sm:$0xff]   ;;  %168 = vst [vmem:[%s294_s3 + $0x2] sm:$0x3f] %v235_v8 }
   0x2   :  { %212 = vmatprep.subr.bf16.mxu0 %v228_v0  ;;  %v233_v3 = vld [vmem:[%s293_s0] sm:$0xff]   ;;  %v231_v4 = vld [vmem:[%s292_s1 + $0x18] sm:$0xff]   ;;  %v234_v7 = vld [vmem:[%s293_s0 + $0x8] sm:$0xff]  }
   0x3   :  { %213 = vmatpush3.bf16.msra.mxu0 %v228_v0  ;;  %222 = vmatprep.mubr.msk.bf16.mxu0 %vm64_vm0, %v233_v3  ;;  %v232_v5 = vld [vmem:[%s292_s1 + $0x20] ss:$0 sps:$4 sm:$0xff]  }
   0x4   :  { %214 = vmatprep.subr.bf16.mxu0 %v229_v1  ;;  %v73_v6 = vsel %vm71_vm1, %v232_v5, 0 }
   0x7   :  { %215 = vmatpush3.bf16.msra.mxu0 %v229_v1 }
   0x8   :  { %216 = vmatprep.subr.bf16.mxu0 %v230_v2 }
   0xb   :  { %217 = vmatpush3.bf16.msra.mxu0 %v230_v2 }
   0xc   :  { %218 = vmatprep.subr.bf16.mxu0 %v231_v4 }
   0xf   :  { %219 = vmatpush3.bf16.msra.mxu0 %v231_v4 }
  0x10   :  { %226 = vmatprep.subr.msk.bf16.mxu0 %vm71_vm1, %v232_v5 }
  0x13   :  { %221 = vmatpush3.bf16.msra.mxu0 %v73_v6 }
  0x16   :  { %223 = vmatmul.mubr.msk.bf16.vlgmr.msra.gmra.mrb[0].mxu0 %vm64_vm0, %v234_v7 }
  0xe9   :  { %v224_v9 = vpop.f32.mrb[0].mxu0 }
  0xea   :  { %v109_v10 = vpop.f32.mrb[1].mxu0  ;;  %v156_v18 = vmul.f32 %v224_v9, %v224_v9 }
  0xeb   :  { %v225_v11 = vpop.f32.mrb[2].mxu0  ;;  %v154_v14 = vmul.f32 %v109_v10, %v109_v10 }
  0xec   :  { %v202_v12 = vpack.c.bf16 %v225_v11, %v224_v9  ;;  %v112_v13 = vpop.f32.mrb[3].mxu0  ;;  %v157_v21 = vmul.f32 %v225_v11, %v225_v11 }
  0xed   :  { %v197_v15 = vpack.c.bf16 %v112_v13, %v109_v10  ;;  %v144_v16 = vadd.f32 %v112_v13, %v109_v10  ;;  %v155_v17 = vmul.f32 %v112_v13, %v112_v13 }
  0xee   :  { %204 = vst [vmem:[%s295_s2 + $0x8] sm:$0xff] %v202_v12  }
  0xef   :  { %198 = vst [vmem:[%s295_s2] sm:$0xff] %v197_v15   ;;  %v145_v19 = vadd.f32 %v224_v9, %v144_v16  ;;  %v158_v20 = vadd.f32 %v155_v17, %v154_v14 }
  0xf1   :  { %v146_v22 = vadd.f32 %v225_v11, %v145_v19  ;;  %v159_v23 = vadd.f32 %v158_v20, %v156_v18 }
  0xf3   :  { %v147_v24 = vrot.slane %v146_v22, 4  ;;  %v160_v25 = vadd.f32 %v159_v23, %v157_v21 }
  0xf5   :  { %v148_v26 = vadd.f32 %v147_v24, %v146_v22  ;;  %v161_v27 = vrot.slane %v160_v25, 4 }
  0xf7   :  { %v149_v28 = vrot.slane %v148_v26, 2  ;;  %v162_v29 = vadd.f32 %v161_v27, %v160_v25 }
  0xf9   :  { %v150_v30 = vadd.f32 %v149_v28, %v148_v26  ;;  %v163_v31 = vrot.slane %v162_v29, 2 }
  0xfb   :  { %v151_v32 = vrot.slane %v150_v30, 1  ;;  %v164_v33 = vadd.f32 %v163_v31, %v162_v29 }
  0xfd   :  { %v152_v34 = vadd.f32 %v151_v32, %v150_v30  ;;  %v165_v35 = vrot.slane %v164_v33, 1 }
  0xff   :  { %153 = vst [vmem:[%s294_s3] sm:$0x1] %v152_v34  ;;  %v166_v36 = vadd.f32 %v165_v35, %v164_v33 }
 0x101   :  { %167 = vst [vmem:[%s294_s3 + $0x1] sm:$0x1] %v166_v36 }

// kernel: _lambda_.12
= control target key start
LH: loop header
LB: loop body
LE: loop exit
PB: predicated region body
PF: predicated region fallthrough
CT: control target
= control target key end

     0   :  { %s140_s0 = inlined_call_operand.vmem [shape: bf16[32,128], index: 0, kind: input, shape index: {}]   ;;  %s141_s1 = inlined_call_operand.vmem [shape: f32[1,128], index: 1, kind: input, shape index: {}]   ;;  %s142_s2 = inlined_call_operand.vmem [shape: f32[1,128], index: 2, kind: input, shape index: {}]   ;;  %s143_s3 = inlined_call_operand.vmem [shape: bf16[32,128], index: 3, kind: output, shape index: {}]  }
   0x1   :  { %v83_v0 = vld [vmem:[%s140_s0] sm:$0xff]   ;;  %v100_v4 = vld [vmem:[%s140_s0 + $0x8] sm:$0xff]  }
   0x2   :  { %v72_v1 = vld [vmem:[%s141_s1] ss:$0 sm:$0xff]  ;;  %v84_v2 = vunpack.c.l.bf16 %v83_v0  ;;  %v85_v3 = vunpack.c.h.bf16 %v83_v0  ;;  %v88_v6 = vunpack.c.l.bf16 %v100_v4  ;;  %v89_v7 = vunpack.c.h.bf16 %v100_v4 }
   0x3   :  { %v73_v5 = vld [vmem:[%s142_s2] ss:$0 sm:$0xff] }
   0x4   :  { %v29_v8 = vmul.f32 %v84_v2, %v72_v1  ;;  %v30_v9 = vmul.f32 %v85_v3, %v72_v1  ;;  %v31_v10 = vmul.f32 %v88_v6, %v72_v1  ;;  %v32_v11 = vmul.f32 %v89_v7, %v72_v1 }
   0x6   :  { %v40_v12 = vadd.f32 %v73_v5, %v29_v8  ;;  %v41_v13 = vadd.f32 %v73_v5, %v30_v9  ;;  %v42_v14 = vadd.f32 %v73_v5, %v31_v10  ;;  %v43_v15 = vadd.f32 %v73_v5, %v32_v11 }
   0x8   :  { %v44_v16 = vmax.f32 %v40_v12, 0.0  ;;  %v45_v17 = vmax.f32 %v41_v13, 0.0  ;;  %v46_v18 = vmax.f32 %v42_v14, 0.0  ;;  %v47_v19 = vmax.f32 %v43_v15, 0.0 }
   0xa   :  { %v93_v20 = vpack.c.bf16 %v45_v17, %v44_v16  ;;  %v98_v21 = vpack.c.bf16 %v47_v19, %v46_v18 }
   0xc   :  { %94 = vst [vmem:[%s143_s3] sm:$0xff] %v93_v20   ;;  %101 = vst [vmem:[%s143_s3 + $0x8] sm:$0xff] %v98_v21  }

// kernel: tile.17
= control target key start
LH: loop header
LB: loop body
LE: loop exit
PB: predicated region body
PF: predicated region fallthrough
CT: control target
= control target key end

     0   :  { %s22_s0 = inlined_call_operand.vmem [shape: f32[8], index: 0, kind: input, shape index: {}]   ;;  %s23_s1 = inlined_call_operand.vmem [shape: f32[4,8], index: 1, kind: output, shape index: {}]  }
   0x1   :  { %v4_v0 = vld [vmem:[%s22_s0] ss:$0 sm:$0xff] }
   0x2   :  { %5 = vst [vmem:[%s23_s1] sm:$0xf] %v4_v0 }

// kernel: tile.18
= control target key start
LH: loop header
LB: loop body
LE: loop exit
PB: predicated region body
PF: predicated region fallthrough
CT: control target
= control target key end

     0   :  { %vm7_vm0 = vcmask 64512   ;;  %s37_s8 = smov 8   ;;  %s38_s9 = smov 16   ;;  %vm13_vm1 = vcmask 261312   ;;  %vm19_vm2 = vcmask 195712   ;;  %vm25_vm3 = vcmask 130112   ;;  %s55_s0 = inlined_call_operand.vmem [shape: f32[4,8], index: 0, kind: input, shape index: {}]   ;;  %s56_s1 = inlined_call_operand.vmem [shape: f32[32], index: 1, kind: output, shape index: {}]  }
   0x1   :  { %v4_v0 = vld [vmem:[%s55_s0] sm:$0xf]  ;;  %s36_s0 = smov 24  }
   0x2   :  { %5 = vst [vmem:[#allocation1] sm:$0xf] %v4_v0 }
   0x9   :  { %v10_v1 = vld [vmem:[#allocation1 + $0x3] sm:$0x1]   ;;  %v22_v2 = vld [vmem:[#allocation1 + $0x1] sm:$0x1]   ;;  %v6_v3 = vld [vmem:[#allocation1] sm:$0x1]  }
   0xa   :  { %11 = vrot.lane.b32.xlu0 %v10_v1, %s36_s0  ;;  %23 = vrot.lane.b32.xlu1 %v22_v2, %s37_s8  ;;  %v16_v4 = vld [vmem:[#allocation1 + $0x2] sm:$0x1]   ;;  %8 = vst.msk [vmem:[#allocation0] sm:$0x1] %vm7_vm0, %v6_v3  }
   0xe   :  { %17 = vrot.lane.b32.xlu0 %v16_v4, %s38_s9 }
  0x7c   :  { %v12_v5 = vpop.permute.xlu0 %11   ;;  %v24_v6 = vpop.permute.xlu1 %23  }
  0x7d   :  { %14 = vst.msk [vmem:[#allocation0] sm:$0x1] %vm13_vm1, %v12_v5  }
  0x80   :  { %v18_v7 = vpop.permute.xlu0 %17  }
  0x81   :  { %20 = vst.msk [vmem:[#allocation0] sm:$0x1] %vm19_vm2, %v18_v7  }
  0x82   :  { %26 = vst.msk [vmem:[#allocation0] sm:$0x1] %vm25_vm3, %v24_v6  }
  0x89   :  { %v30_v8 = vld [vmem:[#allocation0] sm:$0x1] }
  0x8a   :  { %32 = vst [vmem:[%s56_s1] sm:$0x1] %v30_v8 }

// kernel: _lambda_.13
= control target key start
LH: loop header
LB: loop body
LE: loop exit
PB: predicated region body
PF: predicated region fallthrough
CT: control target
= control target key end

     0   :  { %s362_s1 = inlined_call_operand.vmem [shape: f32[256,128], index: 1, kind: input, shape index: {}]   ;;  %s363_s0 = inlined_call_operand.vmem [shape: f32[16,256], index: 0, kind: input, shape index: {}]   ;;  %s364_s2 = inlined_call_operand.vmem [shape: f32[1,128], index: 2, kind: input, shape index: {}]   ;;  %s365_s3 = inlined_call_operand.vmem [shape: f32[16,128], index: 3, kind: output, shape index: {}]  }
   0x1   :  { %v34_v0 = vld [vmem:[%s362_s1 + $0x80] sm:$0xff]  ;;  %v35_v1 = vld [vmem:[%s362_s1 + $0x88] sm:$0xff]  ;;  %v36_v5 = vld [vmem:[%s362_s1 + $0x90] sm:$0xff] }
   0x2   :  { %v18_v2 = vld [vmem:[%s362_s1] sm:$0xff]  ;;  %v177_v3 = vpack.c.bf16 %v35_v1, %v34_v0  ;;  %v19_v4 = vld [vmem:[%s362_s1 + $0x8] sm:$0xff]  ;;  %v37_v6 = vld [vmem:[%s362_s1 + $0x98] sm:$0xff] }
   0x3   :  { %v179_v7 = vpack.c.bf16 %v19_v4, %v18_v2  ;;  %v181_v8 = vpack.c.bf16 %v37_v6, %v36_v5  ;;  %v20_v9 = vld [vmem:[%s362_s1 + $0x10] sm:$0xff]  ;;  %v21_v10 = vld [vmem:[%s362_s1 + $0x18] sm:$0xff]  ;;  %v38_v11 = vld [vmem:[%s362_s1 + $0xa0] sm:$0xff] }
   0x4   :  { %178 = vmatprep.subr.bf16.mxu0 %v177_v3  ;;  %209 = vmatprep.subr.bf16.mxu1 %v177_v3  ;;  %v39_v12 = vld [vmem:[%s362_s1 + $0xa8] sm:$0xff]  ;;  %v183_v13 = vpack.c.bf16 %v21_v10, %v20_v9  ;;  %v22_v15 = vld [vmem:[%s362_s1 + $0x20] sm:$0xff]  ;;  %v40_v17 = vld [vmem:[%s362_s1 + $0xb0] sm:$0xff] }
   0x5   :  { %180 = vmatpush3.bf16.msra.mxu0 %v179_v7  ;;  %217 = vmatpush3.bf16.msra.mxu1 %v179_v7  ;;  %v185_v14 = vpack.c.bf16 %v39_v12, %v38_v11  ;;  %v23_v16 = vld [vmem:[%s362_s1 + $0x28] sm:$0xff]  ;;  %v41_v18 = vld [vmem:[%s362_s1 + $0xb8] sm:$0xff]  ;;  %v24_v21 = vld [vmem:[%s362_s1 + $0x30] sm:$0xff] }
   0x6   :  { %182 = vmatprep.subr.bf16.mxu0 %v181_v8  ;;  %210 = vmatprep.subr.bf16.mxu1 %v181_v8  ;;  %v187_v19 = vpack.c.bf16 %v23_v16, %v22_v15  ;;  %v189_v20 = vpack.c.bf16 %v41_v18, %v40_v17  ;;  %v25_v22 = vld [vmem:[%s362_s1 + $0x38] sm:$0xff]  ;;  %v42_v23 = vld [vmem:[%s362_s1 + $0xc0] sm:$0xff]  ;;  %v43_v24 = vld [vmem:[%s362_s1 + $0xc8] sm:$0xff] }
   0x7   :  { %v15_v25 = vld [vmem:[%s363_s0 + $0x8] sm:$0xff]  ;;  %v17_v26 = vld [vmem:[%s363_s0 + $0x18] sm:$0xff]  ;;  %v191_v27 = vpack.c.bf16 %v25_v22, %v24_v21  ;;  %v193_v28 = vpack.c.bf16 %v43_v24, %v42_v23  ;;  %v26_v29 = vld [vmem:[%s362_s1 + $0x40] sm:$0xff] }
   0x8   :  { %121 = vmatprep.mubr.f32.mxu0 %v15_v25  ;;  %v27_v30 = vld [vmem:[%s362_s1 + $0x48] sm:$0xff]  ;;  %v44_v31 = vld [vmem:[%s362_s1 + $0xd0] sm:$0xff]  ;;  %v45_v32 = vld [vmem:[%s362_s1 + $0xd8] sm:$0xff]  ;;  %126 = vmatprep.mubr.f32.mxu1 %v17_v26 }
   0x9   :  { %184 = vmatpush3.bf16.msra.mxu0 %v183_v13  ;;  %218 = vmatpush3.bf16.msra.mxu1 %v183_v13  ;;  %v195_v33 = vpack.c.bf16 %v27_v30, %v26_v29  ;;  %v197_v34 = vpack.c.bf16 %v45_v32, %v44_v31  ;;  %v28_v35 = vld [vmem:[%s362_s1 + $0x50] sm:$0xff]  ;;  %v29_v36 = vld [vmem:[%s362_s1 + $0x58] sm:$0xff]  ;;  %v46_v37 = vld [vmem:[%s362_s1 + $0xe0] sm:$0xff] }
   0xa   :  { %186 = vmatprep.subr.bf16.mxu0 %v185_v14  ;;  %211 = vmatprep.subr.bf16.mxu1 %v185_v14  ;;  %v47_v38 = vld [vmem:[%s362_s1 + $0xe8] sm:$0xff]  ;;  %v199_v39 = vpack.c.bf16 %v29_v36, %v28_v35  ;;  %v30_v41 = vld [vmem:[%s362_s1 + $0x60] sm:$0xff]  ;;  %v48_v43 = vld [vmem:[%s362_s1 + $0xf0] sm:$0xff] }
   0xb   :  { %v201_v40 = vpack.c.bf16 %v47_v38, %v46_v37  ;;  %v31_v42 = vld [vmem:[%s362_s1 + $0x68] sm:$0xff]  ;;  %v49_v44 = vld [vmem:[%s362_s1 + $0xf8] sm:$0xff]  ;;  %v32_v47 = vld [vmem:[%s362_s1 + $0x70] sm:$0xff] }
   0xc   :  { %v203_v45 = vpack.c.bf16 %v31_v42, %v30_v41  ;;  %v205_v46 = vpack.c.bf16 %v49_v44, %v48_v43  ;;  %v33_v48 = vld [vmem:[%s362_s1 + $0x78] sm:$0xff]  ;;  %v14_v50 = vld [vmem:[%s363_s0] sm:$0xff]  ;;  %v16_v51 = vld [vmem:[%s363_s0 + $0x10] sm:$0xff] }
   0xd   :  { %188 = vmatpush3.bf16.msra.mxu0 %v187_v19  ;;  %219 = vmatpush3.bf16.msra.mxu1 %v187_v19  ;;  %v207_v49 = vpack.c.bf16 %v33_v48, %v32_v47  ;;  %v138_v54 = vld [vmem:[%s364_s2] ss:$0 sm:$0xff] }
   0xe   :  { %190 = vmatprep.subr.bf16.mxu0 %v189_v20  ;;  %212 = vmatprep.subr.bf16.mxu1 %v189_v20 }
  0x11   :  { %192 = vmatpush3.bf16.msra.mxu0 %v191_v27  ;;  %220 = vmatpush3.bf16.msra.mxu1 %v191_v27 }
  0x12   :  { %194 = vmatprep.subr.bf16.mxu0 %v193_v28  ;;  %213 = vmatprep.subr.bf16.mxu1 %v193_v28 }
  0x15   :  { %196 = vmatpush3.bf16.msra.mxu0 %v195_v33  ;;  %221 = vmatpush3.bf16.msra.mxu1 %v195_v33 }
  0x16   :  { %198 = vmatprep.subr.bf16.mxu0 %v197_v34  ;;  %214 = vmatprep.subr.bf16.mxu1 %v197_v34 }
  0x19   :  { %200 = vmatpush3.bf16.msra.mxu0 %v199_v39  ;;  %222 = vmatpush3.bf16.msra.mxu1 %v199_v39 }
  0x1a   :  { %202 = vmatprep.subr.bf16.mxu0 %v201_v40  ;;  %215 = vmatprep.subr.bf16.mxu1 %v201_v40 }
  0x1d   :  { %204 = vmatpush3.bf16.msra.mxu0 %v203_v45  ;;  %223 = vmatpush3.bf16.msra.mxu1 %v203_v45 }
  0x1e   :  { %206 = vmatprep.subr.bf16.mxu0 %v205_v46  ;;  %216 = vmatprep.subr.bf16.mxu1 %v205_v46 }
  0x21   :  { %208 = vmatpush3.bf16.msra.mxu0 %v207_v49  ;;  %224 = vmatpush3.bf16.msra.mxu1 %v207_v49 }
  0x24   :  { %122 = vmatmul.mubr.f32.vlgmr.msra.gmra.mrb[0].mxu0 %v14_v50  ;;  %127 = vmatmul.mubr.f32.vlgmr.msra.gmra.mrb[0].mxu1 %v16_v51 }
  0xf7   :  { %v171_v52 = vpop.f32.mrb[0].mxu0  ;;  %v174_v53 = vpop.f32.mrb[0].mxu1 }
  0xf8   :  { %v172_v55 = vpop.f32.mrb[1].mxu0  ;;  %v175_v56 = vpop.f32.mrb[1].mxu1 }
  0xf9   :  { %v173_v57 = vadd.f32 %v172_v55, %v171_v52  ;;  %v176_v58 = vadd.f32 %v175_v56, %v174_v53 }
  0xfb   :  { %v124_v59 = vadd.f32 %v173_v57, %v138_v54  ;;  %v129_v60 = vadd.f32 %v176_v58, %v138_v54 }
  0xfd   :  { %132 = vst [vmem:[%s365_s3] sm:$0xff] %v124_v59  ;;  %133 = vst [vmem:[%s365_s3 + $0x8] sm:$0xff] %v129_v60 }

// kernel: _lambda_.14
= control target key start
LH: loop header
LB: loop body
LE: loop exit
PB: predicated region body
PF: predicated region fallthrough
CT: control target
= control target key end

     0   :  { %v143_v3 = vmov 0.0   ;;  %vm36_vm0 = vcmask 261120   ;;  %v26_v15 = vlaneseq  ;;  %s209_s1 = inlined_call_operand.vmem [shape: f32[32,256], index: 1, kind: input, shape index: {}]   ;;  %s210_s0 = inlined_call_operand.vmem [shape: f32[16,32], index: 0, kind: input, shape index: {}]   ;;  %s211_s2 = inlined_call_operand.vmem [shape: f32[1,256], index: 2, kind: input, shape index: {}]   ;;  %s212_s3 = inlined_call_operand.vmem [shape: f32[16,256], index: 3, kind: output, shape index: {}]  }
   0x1   :  { %v17_v0 = vld [vmem:[%s209_s1 + $0x8] sm:$0xff]  ;;  %v19_v1 = vld [vmem:[%s209_s1 + $0x18] sm:$0xff]  ;;  %v16_v2 = vld [vmem:[%s209_s1] sm:$0xff]  ;;  %107 = vmatprep.mubr.f32.mxu0 %v143_v3  ;;  %113 = vmatprep.mubr.f32.mxu1 %v143_v3 }
   0x2   :  { %v130_v4 = vpack.c.bf16 %v19_v1, %v17_v0  ;;  %v18_v5 = vld [vmem:[%s209_s1 + $0x10] sm:$0xff]  ;;  %v21_v6 = vld [vmem:[%s209_s1 + $0x28] sm:$0xff]  ;;  %v23_v7 = vld [vmem:[%s209_s1 + $0x38] sm:$0xff]  ;;  %v27_v16 = vshrl.u32 %v26_v15, 7 }
   0x3   :  { %v132_v8 = vpack.c.bf16 %v18_v5, %v16_v2  ;;  %v134_v9 = vpack.c.bf16 %v23_v7, %v21_v6  ;;  %v20_v10 = vld [vmem:[%s209_s1 + $0x20] sm:$0xff]  ;;  %v22_v11 = vld [vmem:[%s209_s1 + $0x30] sm:$0xff]  ;;  %v15_v14 = vld [vmem:[%s210_s0 + $0x8] sm:$0xff] }
   0x4   :  { %131 = vmatprep.subr.bf16.mxu0 %v130_v4  ;;  %138 = vmatprep.subr.bf16.mxu1 %v130_v4  ;;  %v136_v12 = vpack.c.bf16 %v22_v11, %v20_v10  ;;  %v14_v13 = vld [vmem:[%s210_s0] sm:$0xff]  ;;  %v28_v17 = vsub.s32 0, %v27_v16  ;;  %v32_v19 = vsub.s32 1, %v27_v16 }
   0x5   :  { %133 = vmatpush1.bf16.msra.mxu0 %v132_v8  ;;  %140 = vmatpush1.bf16.msra.mxu1 %v132_v8  ;;  %v24_v18 = vld [vmem:[%s211_s2] sm:$0x3] }
   0x6   :  { %135 = vmatprep.subr.bf16.mxu0 %v134_v9  ;;  %139 = vmatprep.subr.bf16.mxu1 %v134_v9  ;;  %v29_v20 = vrot.slane %v24_v18, %v28_v17  ;;  %v33_v21 = vrot.slane %v24_v18, %v32_v19 }
   0x9   :  { %137 = vmatpush1.bf16.msra.mxu0 %v136_v12  ;;  %141 = vmatpush1.bf16.msra.mxu1 %v136_v12 }
   0xc   :  { %128 = vmatmul.mubr.msk.f32.vlgmr.msra.gmra.mrb[0].mxu0 %vm36_vm0, %v14_v13  ;;  %129 = vmatmul.mubr.msk.f32.vlgmr.msra.gmra.mrb[0].mxu1 %vm36_vm0, %v15_v14 }
  0xdf   :  { %v109_v22 = vpop.f32.mrb[0].mxu0  ;;  %v115_v23 = vpop.f32.mrb[0].mxu1 }
  0xe0   :  { %v110_v24 = vadd.f32 %v109_v22, %v29_v20  ;;  %v116_v25 = vadd.f32 %v115_v23, %v29_v20  ;;  %v111_v26 = vpop.f32.mrb[1].mxu0  ;;  %v117_v27 = vpop.f32.mrb[1].mxu1 }
  0xe1   :  { %v112_v28 = vadd.f32 %v111_v26, %v33_v21  ;;  %v118_v29 = vadd.f32 %v117_v27, %v33_v21 }
  0xe2   :  { %120 = vst [vmem:[%s212_s3] sm:$0xff] %v110_v24  ;;  %122 = vst [vmem:[%s212_s3 + $0x10] sm:$0xff] %v116_v25 }
  0xe3   :  { %121 = vst [vmem:[%s212_s3 + $0x8] sm:$0xff] %v112_v28  ;;  %123 = vst [vmem:[%s212_s3 + $0x18] sm:$0xff] %v118_v29 }

// kernel: _lambda_.15
= control target key start
LH: loop header
LB: loop body
LE: loop exit
PB: predicated region body
PF: predicated region fallthrough
CT: control target
= control target key end

     0   :  { %v286_v0 = vmov 0   ;;  %vm108_vm0 = vcmask 130048   ;;  %v287_v14 = vmov 0.0   ;;  %s362_s1 = inlined_call_operand.vmem [shape: bf16[144,128], index: 1, kind: input, shape index: {}]   ;;  %s363_s0 = inlined_call_operand.vmem [shape: bf16[32,144], index: 0, kind: input, shape index: {}]   ;;  %s364_s3 = inlined_call_operand.vmem [shape: f32[1,8,128], index: 3, kind: output, shape index: {1}]   ;;  %s365_s2 = inlined_call_operand.vmem [shape: bf16[32,128], index: 2, kind: output, shape index: {0}]  }
   0x1   :  { %115 = vmatprep.subr.bf16.mxu0 %v286_v0  ;;  %251 = vmatprep.subr.bf16.mxu1 %v286_v0  ;;  %v271_v1 = vld [vmem:[%s362_s1] sm:$0xff]   ;;  %v272_v2 = vld [vmem:[%s362_s1 + $0x8] sm:$0xff]   ;;  %v273_v3 = vld [vmem:[%s362_s1 + $0x10] sm:$0xff]   ;;  %208 = vst [vmem:[%s364_s3 + $0x2] sm:$0x3f] %v287_v14 }
   0x2   :  { %116 = vmatpush1.bf16.msra.mxu0 %v271_v1  ;;  %260 = vmatpush1.bf16.msra.mxu1 %v271_v1  ;;  %v274_v4 = vld [vmem:[%s362_s1 + $0x18] sm:$0xff]   ;;  %v282_v5 = vld [vmem:[%s363_s0 + $0x4] ss:$8 sps:$4 sm:$0xff]   ;;  %v277_v9 = vld [vmem:[%s362_s1 + $0x30] sm:$0xff]  }
   0x3   :  { %117 = vmatprep.subr.bf16.mxu0 %v286_v0  ;;  %252 = vmatprep.subr.bf16.mxu1 %v286_v0  ;;  %v285_v6 = vld [vmem:[%s363_s0 + $0x14] ss:$8 sps:$4 sm:$0xff]   ;;  %v275_v7 = vld [vmem:[%s362_s1 + $0x20] sm:$0xff]   ;;  %v276_v8 = vld [vmem:[%s362_s1 + $0x28] sm:$0xff]  }
   0x4   :  { %230 = vmatprep.mubr.msk.bf16.mxu0 %vm108_vm0, %v282_v5  ;;  %231 = vmatprep.mubr.msk.bf16.mxu1 %vm108_vm0, %v285_v6  ;;  %v278_v10 = vld [vmem:[%s362_s1 + $0x38] sm:$0xff]   ;;  %v279_v11 = vld [vmem:[%s362_s1 + $0x40] sm:$0xff]  }
   0x5   :  { %v280_v12 = vld [vmem:[%s363_s0] ss:$8 sps:$4 sm:$0xff]   ;;  %v283_v13 = vld [vmem:[%s363_s0 + $0x10] ss:$8 sps:$4 sm:$0xff]  }
   0x6   :  { %118 = vmatpush1.bf16.msra.mxu0 %v272_v2  ;;  %261 = vmatpush1.bf16.msra.mxu1 %v272_v2 }
   0x7   :  { %119 = vmatprep.subr.bf16.mxu0 %v286_v0  ;;  %253 = vmatprep.subr.bf16.mxu1 %v286_v0 }
   0xa   :  { %120 = vmatpush1.bf16.msra.mxu0 %v273_v3  ;;  %262 = vmatpush1.bf16.msra.mxu1 %v273_v3 }
   0xb   :  { %121 = vmatprep.subr.bf16.mxu0 %v286_v0  ;;  %254 = vmatprep.subr.bf16.mxu1 %v286_v0 }
   0xe   :  { %122 = vmatpush1.bf16.msra.mxu0 %v274_v4  ;;  %263 = vmatpush1.bf16.msra.mxu1 %v274_v4 }
   0xf   :  { %123 = vmatprep.subr.bf16.mxu0 %v286_v0  ;;  %255 = vmatprep.subr.bf16.mxu1 %v286_v0 }
  0x12   :  { %124 = vmatpush1.bf16.msra.mxu0 %v275_v7  ;;  %264 = vmatpush1.bf16.msra.mxu1 %v275_v7 }
  0x13   :  { %125 = vmatprep.subr.bf16.mxu0 %v286_v0  ;;  %256 = vmatprep.subr.bf16.mxu1 %v286_v0 }
  0x16   :  { %126 = vmatpush1.bf16.msra.mxu0 %v276_v8  ;;  %265 = vmatpush1.bf16.msra.mxu1 %v276_v8 }
  0x17   :  { %127 = vmatprep.subr.bf16.mxu0 %v286_v0  ;;  %257 = vmatprep.subr.bf16.mxu1 %v286_v0 }
  0x1a   :  { %128 = vmatpush1.bf16.msra.mxu0 %v277_v9  ;;  %266 = vmatpush1.bf16.msra.mxu1 %v277_v9 }
  0x1b   :  { %129 = vmatprep.subr.bf16.mxu0 %v286_v0  ;;  %258 = vmatprep.subr.bf16.mxu1 %v286_v0 }
  0x1e   :  { %130 = vmatpush1.bf16.msra.mxu0 %v278_v10  ;;  %267 = vmatpush1.bf16.msra.mxu1 %v278_v10 }
  0x1f   :  { %131 = vmatprep.subr.bf16.mxu0 %v286_v0  ;;  %259 = vmatprep.subr.bf16.mxu1 %v286_v0 }
  0x22   :  { %132 = vmatpush1.bf16.msra.mxu0 %v279_v11  ;;  %268 = vmatpush1.bf16.msra.mxu1 %v279_v11 }
  0x25   :  { %148 = vmatmul.mubr.bf16.vlgmr.msra.gmra.mrb[0].mxu0 %v280_v12  ;;  %156 = vmatmul.mubr.bf16.vlgmr.msra.gmra.mrb[0].mxu1 %v283_v13 }
  0xf8   :  { %v149_v15 = vpop.f32.mrb[0].mxu0  ;;  %v157_v16 = vpop.f32.mrb[0].mxu1 }
  0xf9   :  { %v151_v17 = vpop.f32.mrb[1].mxu0  ;;  %v159_v18 = vpop.f32.mrb[1].mxu1  ;;  %v194_v19 = vmul.f32 %v149_v15, %v149_v15  ;;  %v196_v20 = vmul.f32 %v157_v16, %v157_v16 }
  0xfa   :  { %v152_v21 = vpop.f32.mrb[2].mxu0  ;;  %v160_v22 = vpop.f32.mrb[2].mxu1 }
  0xfb   :  { %v243_v23 = vpack.c.bf16 %v152_v21, %v149_v15  ;;  %v184_v24 = vadd.f32 %v152_v21, %v149_v15  ;;  %v195_v25 = vmul.f32 %v152_v21, %v152_v21  ;;  %v154_v26 = vpop.f32.mrb[3].mxu0  ;;  %v248_v27 = vpack.c.bf16 %v160_v22, %v157_v16  ;;  %v162_v28 = vpop.f32.mrb[3].mxu1 }
  0xfc   :  { %v197_v32 = vmul.f32 %v160_v22, %v160_v22 }
  0xfd   :  { %244 = vst [vmem:[%s365_s2] sm:$0xff] %v243_v23   ;;  %v198_v29 = vadd.f32 %v195_v25, %v194_v19  ;;  %250 = vst [vmem:[%s365_s2 + $0x8] sm:$0xff] %v248_v27   ;;  %v185_v30 = vadd.f32 %v184_v24, %v157_v16 }
  0xff   :  { %v186_v31 = vadd.f32 %v185_v30, %v160_v22  ;;  %v199_v33 = vadd.f32 %v198_v29, %v196_v20 }
 0x101   :  { %v187_v34 = vrot.slane %v186_v31, 4  ;;  %v200_v35 = vadd.f32 %v199_v33, %v197_v32 }
 0x103   :  { %v188_v36 = vadd.f32 %v187_v34, %v186_v31  ;;  %v201_v37 = vrot.slane %v200_v35, 4 }
 0x105   :  { %v189_v38 = vrot.slane %v188_v36, 2  ;;  %v202_v39 = vadd.f32 %v201_v37, %v200_v35 }
 0x107   :  { %v190_v40 = vadd.f32 %v189_v38, %v188_v36  ;;  %v203_v41 = vrot.slane %v202_v39, 2 }
 0x109   :  { %v191_v42 = vrot.slane %v190_v40, 1  ;;  %v204_v43 = vadd.f32 %v203_v41, %v202_v39 }
 0x10b   :  { %v192_v44 = vadd.f32 %v191_v42, %v190_v40  ;;  %v205_v45 = vrot.slane %v204_v43, 1 }
 0x10d   :  { %193 = vst [vmem:[%s364_s3] sm:$0x1] %v192_v44  ;;  %v206_v46 = vadd.f32 %v205_v45, %v204_v43 }
 0x10f   :  { %207 = vst [vmem:[%s364_s3 + $0x1] sm:$0x1] %v206_v46 }

// kernel: _lambda_.17
= control target key start
LH: loop header
LB: loop body
LE: loop exit
PB: predicated region body
PF: predicated region fallthrough
CT: control target
= control target key end

     0   :  { %vm114_vm0 = vcmask 588800   ;;  %vm139_vm1 = vcmask 1043456   ;;  %s512_s1 = inlined_call_operand.vmem [shape: bf16[72,128], index: 1, kind: input, shape index: {}]   ;;  %s513_s0 = inlined_call_operand.vmem [shape: bf16[128,72], index: 0, kind: input, shape index: {}]   ;;  %s514_s2 = inlined_call_operand.vmem [shape: f32[1,128], index: 2, kind: input, shape index: {}]   ;;  %s515_s3 = inlined_call_operand.vmem [shape: f32[128,128], index: 3, kind: output, shape index: {}]  }
   0x1   :  { %v349_v0 = vld [vmem:[%s512_s1] sm:$0xff]   ;;  %v350_v1 = vld [vmem:[%s512_s1 + $0x8] sm:$0xff]   ;;  %v351_v2 = vld [vmem:[%s512_s1 + $0x10] sm:$0xff]  }
   0x2   :  { %311 = vmatprep.subr.bf16.mxu0 %v349_v0  ;;  %337 = vmatprep.subr.bf16.mxu1 %v349_v0  ;;  %v354_v3 = vld [vmem:[%s513_s0] sm:$0xff]   ;;  %v352_v5 = vld [vmem:[%s512_s1 + $0x18] sm:$0xff]   ;;  %v356_v8 = vld [vmem:[%s513_s0 + $0x8] sm:$0xff]  }
   0x3   :  { %312 = vmatpush3.bf16.msra.mxu0 %v349_v0  ;;  %342 = vmatpush3.bf16.msra.mxu1 %v349_v0  ;;  %v355_v4 = vld [vmem:[%s513_s0 + $0x20] sm:$0xff]   ;;  %v357_v9 = vld [vmem:[%s513_s0 + $0x28] sm:$0xff]   ;;  %v358_v10 = vld [vmem:[%s513_s0 + $0x10] sm:$0xff]  }
   0x4   :  { %313 = vmatprep.subr.bf16.mxu0 %v350_v1  ;;  %338 = vmatprep.subr.bf16.mxu1 %v350_v1  ;;  %v353_v6 = vld [vmem:[%s512_s1 + $0x20] ss:$0 sps:$4 sm:$0xff]   ;;  %v359_v11 = vld [vmem:[%s513_s0 + $0x30] sm:$0xff]   ;;  %v360_v12 = vld [vmem:[%s513_s0 + $0x18] sm:$0xff]  }
   0x5   :  { %321 = vmatprep.mubr.msk.bf16.mxu0 %vm114_vm0, %v354_v3  ;;  %329 = vmatprep.mubr.msk.bf16.mxu1 %vm114_vm0, %v355_v4  ;;  %v141_v7 = vsel %vm139_vm1, %v353_v6, 0  ;;  %v361_v13 = vld [vmem:[%s513_s0 + $0x38] sm:$0xff]   ;;  %v276_v14 = vld [vmem:[%s514_s2] ss:$0 sm:$0xff] }
   0x7   :  { %314 = vmatpush3.bf16.msra.mxu0 %v350_v1  ;;  %343 = vmatpush3.bf16.msra.mxu1 %v350_v1 }
   0x8   :  { %315 = vmatprep.subr.bf16.mxu0 %v351_v2  ;;  %339 = vmatprep.subr.bf16.mxu1 %v351_v2 }
   0xb   :  { %316 = vmatpush3.bf16.msra.mxu0 %v351_v2  ;;  %344 = vmatpush3.bf16.msra.mxu1 %v351_v2 }
   0xc   :  { %317 = vmatprep.subr.bf16.mxu0 %v352_v5  ;;  %340 = vmatprep.subr.bf16.mxu1 %v352_v5 }
   0xf   :  { %318 = vmatpush3.bf16.msra.mxu0 %v352_v5  ;;  %345 = vmatpush3.bf16.msra.mxu1 %v352_v5 }
  0x10   :  { %347 = vmatprep.subr.msk.bf16.mxu0 %vm139_vm1, %v353_v6  ;;  %348 = vmatprep.subr.msk.bf16.mxu1 %vm139_vm1, %v353_v6 }
  0x13   :  { %320 = vmatpush3.bf16.msra.mxu0 %v141_v7  ;;  %346 = vmatpush3.bf16.msra.mxu1 %v141_v7 }
  0x16   :  { %322 = vmatmul.mubr.msk.bf16.vlgmr.msra.gmra.mrb[0].mxu0 %vm114_vm0, %v356_v8  ;;  %330 = vmatmul.mubr.msk.bf16.vlgmr.msra.gmra.mrb[0].mxu1 %vm114_vm0, %v357_v9 }
  0x17   :  { %325 = vmatprep.mubr.msk.bf16.mxu0 %vm114_vm0, %v358_v10  ;;  %333 = vmatprep.mubr.msk.bf16.mxu1 %vm114_vm0, %v359_v11 }
  0x1e   :  { %326 = vmatmul.mubr.msk.bf16.gmra.mrb[4].mxu0 %vm114_vm0, %v360_v12  ;;  %334 = vmatmul.mubr.msk.bf16.gmra.mrb[4].mxu1 %vm114_vm0, %v361_v13 }
  0xe9   :  { %v323_v15 = vpop.f32.mrb[0].mxu0  ;;  %v331_v16 = vpop.f32.mrb[0].mxu1 }
  0xea   :  { %v186_v17 = vadd.f32 %v323_v15, %v276_v14  ;;  %v218_v18 = vadd.f32 %v331_v16, %v276_v14  ;;  %v177_v19 = vpop.f32.mrb[1].mxu0  ;;  %v209_v20 = vpop.f32.mrb[1].mxu1 }
  0xeb   :  { %v178_v21 = vadd.f32 %v276_v14, %v177_v19  ;;  %v210_v22 = vadd.f32 %v276_v14, %v209_v20  ;;  %v324_v23 = vpop.f32.mrb[2].mxu0  ;;  %v332_v24 = vpop.f32.mrb[2].mxu1 }
  0xec   :  { %362 = vtanh.f32 %v186_v17  ;;  %v189_v25 = vadd.f32 %v324_v23, %v276_v14  ;;  %v180_v26 = vpop.f32.mrb[3].mxu0  ;;  %v212_v27 = vpop.f32.mrb[3].mxu1  ;;  %v221_v28 = vadd.f32 %v332_v24, %v276_v14 }
  0xed   :  { %364 = vtanh.f32 %v218_v18  ;;  %v181_v29 = vadd.f32 %v276_v14, %v180_v26  ;;  %v213_v30 = vadd.f32 %v276_v14, %v212_v27 }
  0xee   :  { %366 = vtanh.f32 %v178_v21 }
  0xef   :  { %368 = vtanh.f32 %v210_v22 }
  0xf0   :  { %370 = vtanh.f32 %v189_v25 }
  0xf1   :  { %372 = vtanh.f32 %v221_v28  ;;  %v327_v31 = vpop.f32.mrb[4].mxu0  ;;  %v335_v32 = vpop.f32.mrb[4].mxu1 }
  0xf2   :  { %374 = vtanh.f32 %v181_v29  ;;  %v202_v33 = vadd.f32 %v327_v31, %v276_v14  ;;  %v234_v34 = vadd.f32 %v335_v32, %v276_v14  ;;  %v193_v35 = vpop.f32.mrb[5].mxu0  ;;  %v225_v36 = vpop.f32.mrb[5].mxu1 }
  0xf3   :  { %376 = vtanh.f32 %v213_v30  ;;  %v194_v37 = vadd.f32 %v276_v14, %v193_v35  ;;  %v226_v38 = vadd.f32 %v276_v14, %v225_v36  ;;  %v328_v39 = vpop.f32.mrb[6].mxu0  ;;  %v336_v40 = vpop.f32.mrb[6].mxu1 }
  0xf4   :  { %378 = vtanh.f32 %v202_v33  ;;  %v205_v41 = vadd.f32 %v328_v39, %v276_v14  ;;  %v196_v42 = vpop.f32.mrb[7].mxu0  ;;  %v228_v43 = vpop.f32.mrb[7].mxu1  ;;  %v237_v44 = vadd.f32 %v336_v40, %v276_v14 }
  0xf5   :  { %380 = vtanh.f32 %v234_v34  ;;  %v197_v46 = vadd.f32 %v276_v14, %v196_v42  ;;  %v229_v48 = vadd.f32 %v276_v14, %v228_v43 }
  0xf6   :  { %v363_v45 = vpop.eup %362  ;;  %382 = vtanh.f32 %v194_v37 }
  0xf7   :  { %v365_v47 = vpop.eup %364  ;;  %258 = vst [vmem:[%s515_s3 + $0x10] sm:$0xff] %v363_v45  ;;  %384 = vtanh.f32 %v226_v38 }
  0xf8   :  { %v367_v49 = vpop.eup %366  ;;  %266 = vst [vmem:[%s515_s3 + $0x50] sm:$0xff] %v365_v47  ;;  %386 = vtanh.f32 %v205_v41 }
  0xf9   :  { %v369_v50 = vpop.eup %368  ;;  %256 = vst [vmem:[%s515_s3] sm:$0xff] %v367_v49  ;;  %388 = vtanh.f32 %v237_v44 }
  0xfa   :  { %v371_v51 = vpop.eup %370  ;;  %264 = vst [vmem:[%s515_s3 + $0x40] sm:$0xff] %v369_v50  ;;  %390 = vtanh.f32 %v197_v46 }
  0xfb   :  { %v373_v52 = vpop.eup %372  ;;  %259 = vst [vmem:[%s515_s3 + $0x18] sm:$0xff] %v371_v51  ;;  %392 = vtanh.f32 %v229_v48 }
  0xfc   :  { %v375_v53 = vpop.eup %374  ;;  %267 = vst [vmem:[%s515_s3 + $0x58] sm:$0xff] %v373_v52 }
  0xfd   :  { %v377_v54 = vpop.eup %376  ;;  %257 = vst [vmem:[%s515_s3 + $0x8] sm:$0xff] %v375_v53 }
  0xfe   :  { %v379_v55 = vpop.eup %378  ;;  %265 = vst [vmem:[%s515_s3 + $0x48] sm:$0xff] %v377_v54 }
  0xff   :  { %v381_v56 = vpop.eup %380  ;;  %262 = vst [vmem:[%s515_s3 + $0x30] sm:$0xff] %v379_v55 }
 0x100   :  { %v383_v57 = vpop.eup %382  ;;  %270 = vst [vmem:[%s515_s3 + $0x70] sm:$0xff] %v381_v56 }
 0x101   :  { %v385_v58 = vpop.eup %384  ;;  %260 = vst [vmem:[%s515_s3 + $0x20] sm:$0xff] %v383_v57 }
 0x102   :  { %v387_v59 = vpop.eup %386  ;;  %268 = vst [vmem:[%s515_s3 + $0x60] sm:$0xff] %v385_v58 }
 0x103   :  { %v389_v60 = vpop.eup %388  ;;  %263 = vst [vmem:[%s515_s3 + $0x38] sm:$0xff] %v387_v59 }
 0x104   :  { %v391_v61 = vpop.eup %390  ;;  %271 = vst [vmem:[%s515_s3 + $0x78] sm:$0xff] %v389_v60 }
 0x105   :  { %v393_v62 = vpop.eup %392  ;;  %261 = vst [vmem:[%s515_s3 + $0x28] sm:$0xff] %v391_v61 }
 0x106   :  { %269 = vst [vmem:[%s515_s3 + $0x68] sm:$0xff] %v393_v62 }

</bundles_post_ra>
